<compile_context>
chip_gen: v5e
topology: v5e:2x2
jax: 0.10.0
libtpu: 0.0.40
codegen_flags: <defaults>
</compile_context>

<pallas_src>
import functools

import jax
import jax.numpy as jnp
from jax.experimental import pallas as pl
from jax.experimental.pallas import tpu as pltpu


# ----------------------------------------------------------------------------
# Fused forward kernel: one grid step = one batch element (all N points).
# ----------------------------------------------------------------------------

def _fused_forward_kernel(
    pos_ref, xyz_ref,
    w1_ref, b1_ref, w1o_ref, bw1_ref,
    w2_ref, b2_ref, w2o_ref, bw2_ref,
    w3_ref, b3_ref, w3o_ref, b3o_ref,
    wf1_ref, wf2_ref, bh_ref,
    o_ref,
):
    f32, bf16 = jnp.float32, jnp.bfloat16
    pos = pos_ref[0]                        # (N, C0) fourier positional features
    xyz = xyz_ref[0]                        # (N, 3)  coordinate stream

    def mm(a, w_ref):                       # bf16 operands, f32 MXU accumulation
        return jnp.dot(a.astype(bf16), w_ref[...], preferred_element_type=f32)

    def ln_norm(f):                         # single-pass LN; affine folded away
        inv_d = 1.0 / f.shape[-1]
        mu = jnp.sum(f, axis=-1, keepdims=True) * inv_d
        ex2 = jnp.sum(f * f, axis=-1, keepdims=True) * inv_d
        return (f - mu) * jax.lax.rsqrt(ex2 - mu * mu + 1e-5)

    def hyena_features(feat, w_ref, b_ref, wo_ref):
        d = wo_ref.shape[0]
        qkv = mm(feat, w_ref) + b_ref[...]            # (N, 3d) — one MXU pass
        q, k, v = qkv[:, :d], qkv[:, d:2 * d], qkv[:, 2 * d:]
        ctx = jnp.mean(k * v, axis=0, keepdims=True)  # (1, d) global token mixing
        h = q * jax.nn.sigmoid(ctx)
        return mm(h, wo_ref)                          # caller adds output bias

    def coord_gate(f_out, bw_ref, x_in):
        wg, bg = bw_ref[1:2, :], bw_ref[2:3, 0:1]
        gate = jax.nn.sigmoid(jnp.sum(f_out * wg, axis=-1, keepdims=True) + bg)
        return jnp.maximum(x_in * gate, 0.0)          # relu fused with the gate

    # ---- block 1 (features = pos_in) ----
    f1 = hyena_features(pos, w1_ref, b1_ref, w1o_ref) + bw1_ref[0:1, :]
    x1 = coord_gate(f1, bw1_ref, xyz)
    z1 = ln_norm(f1)                        # norm1 affine folded into W2 / B2

    # ---- block 2 (features = [f1, pos_in]) ----
    f2 = hyena_features(jnp.concatenate([z1, pos], axis=-1),
                        w2_ref, b2_ref, w2o_ref) + bw2_ref[0:1, :]
    x2 = coord_gate(f2, bw2_ref, x1)        # x2 only fed block 3's coordinate
    #                                         gate (removed below) -> DCE'd.
    z2 = ln_norm(f2)                        # norm2 affine folded into W3 / B3

    # ---- block 3 (features = [f2, pos_in]) ----
    # Coordinate gate / relu skipped: x3 never feeds the logits.
    f3 = hyena_features(jnp.concatenate([z2, pos], axis=-1),
                        w3_ref, b3_ref, w3o_ref) + b3o_ref[...]
    z3 = ln_norm(f3)                        # norm3 affine folded into Wf1 / bh[0]

    # ---- head: mean-pool -> fc1 (+folded BN) -> relu -> fc2 -> log_softmax ----
    pooled = jnp.mean(z3, axis=0, keepdims=True)      # (1, 256)
    h = jnp.maximum(mm(pooled, wf1_ref) + bh_ref[0:1, :], 0.0)
    # TODO(synk): Dropout(0.3) is identity (eval mode / deterministic).
    logits = mm(h, wf2_ref) + bh_ref[1:2, :]          # (1, 128); pads sit at -1e30
    m = jnp.max(logits, axis=-1, keepdims=True)
    z = logits - m
    logp = z - jnp.log(jnp.sum(jnp.exp(z), axis=-1, keepdims=True))
    # Lane-dense (8, 128) store; row 0 is the result, the wrapper slices it out.
    o_ref[...] = jnp.broadcast_to(logp[None], (1, 8, 128))


# ----------------------------------------------------------------------------
# Pallas wrapper
# ----------------------------------------------------------------------------

def _resident_spec(a):
    """Full-array block with a constant index_map -> stays resident in VMEM."""
    nd = a.ndim
    return pl.BlockSpec(a.shape, lambda b: (0,) * nd)


def fused_forward(pos, xyz, kparams, *, num_class):
    B, N, C0 = pos.shape

    in_specs = ([pl.BlockSpec((1, N, C0), lambda b: (b, 0, 0)),
                 pl.BlockSpec((1, N, 3), lambda b: (b, 0, 0))]
                + [_resident_spec(a) for a in kparams])
    out_specs = pl.BlockSpec((1, 8, 128), lambda b: (b, 0, 0))

    # VMEM budget: resident weights (x2 for pipeline buffers) + per-step
    # pos/xyz tiles (x2 double-buffered) + a conservative live-activation bound.
    # TODO(synk): for N >> 4k points a second grid axis over points (with
    # masked ctx/pool partial sums) would be needed; out of scope here.
    weight_bytes = sum(int(a.size) * a.dtype.itemsize for a in kparams)
    tile_bytes = N * (C0 + 3) * 4
    act_bytes = N * (3 * 256 + 4 * 256 + 2 * (128 + C0)) * 4
    vmem_limit = int(min(max(2 * weight_bytes + 2 * tile_bytes + act_bytes
                             + (4 << 20), 16 << 20), 48 << 20))

    # Advisory cost estimate for the surrounding XLA schedule.
    flops = 0
    for cin, d in ((C0, 64), (C0 + 64, 128), (C0 + 128, 256)):
        flops += 2 * B * N * cin * 3 * d + 2 * B * N * d * d
    flops += 2 * B * 256 * 128 + 2 * B * 128 * 128
    transcendentals = B * (N * (64 + 128 + 2) + 64 + 128 + 256 + 2 * 128)
    bytes_accessed = (weight_bytes + (B * N * (C0 + 3) + B * 8 * 128) * 4)

    out = pl.pallas_call(
        _fused_forward_kernel,
        grid=(B,),
        in_specs=in_specs,
        out_specs=out_specs,
        out_shape=jax.ShapeDtypeStruct((B, 8, 128), jnp.float32),
        compiler_params=pltpu.CompilerParams(
            dimension_semantics=("parallel",),
            vmem_limit_bytes=vmem_limit),
        cost_estimate=pl.CostEstimate(flops=int(flops),
                                      transcendentals=int(transcendentals),
                                      bytes_accessed=int(bytes_accessed)),
    )(pos, xyz, *kparams)
    return out[:, 0, :num_class]


# ----------------------------------------------------------------------------
# Forward pass (mirrors get_model.forward)
# ----------------------------------------------------------------------------

def fourier_pos_enc(xyz, num_bands, max_freq=10.0):
    """xyz: (M, 3) -> (M, 3 + 2*3*num_bands)."""
    # TODO(synk): FourierPositionalEncoding internals are not in the provided
    # source; this is a sin/cos band encoding with a linspace frequency schedule.
    M = xyz.shape[0]
    freqs = jnp.linspace(1.0, max_freq / 2.0, num_bands, dtype=jnp.float32)
    xb = xyz[:, :, None] * (freqs * jnp.pi)
    return jnp.concatenate(
        [xyz, jnp.sin(xb).reshape(M, -1), jnp.cos(xb).reshape(M, -1)], axis=-1)


@functools.partial(jax.jit, static_argnames=("num_bands", "num_class"))
def model_forward(x_bcn, kparams, num_bands, num_class):
    """x_bcn: (B, 3, N) float32 (PyTorch channels-first point-cloud layout)."""
    B, _, N = x_bcn.shape
    xyz = jnp.transpose(x_bcn, (0, 2, 1))                          # (B, N, 3)
    pos = fourier_pos_enc(xyz.reshape(B * N, 3), num_bands).reshape(B, N, -1)
    logp = fused_forward(pos, xyz, kparams, num_class=num_class)
    return logp, None


# ----------------------------------------------------------------------------
# Parameter init (raw, PyTorch-like) and kernel-parameter preparation
# ----------------------------------------------------------------------------

def _normal(key, shape, scale=0.05):
    return scale * jax.random.normal(key, shape, jnp.float32)


def init_hyena(key, c_in, d_out):
    ks = jax.random.split(key, 8)
    return dict(
        w_qkv=_normal(ks[0], (3, c_in, d_out)),
        b_qkv=_normal(ks[1], (3, 1, d_out)),
        wo=_normal(ks[2], (d_out, d_out)),
        bo=_normal(ks[3], (1, d_out)),
        wg=_normal(ks[4], (1, d_out)),
        bg=_normal(ks[5], (1, 1)),
        ln_gamma=1.0 + _normal(ks[6], (d_out,), 0.1),
        ln_beta=_normal(ks[7], (d_out,), 0.1),
    )


def init_params(key, hyena_in, num_class):
    ks = jax.random.split(key, 11)
    return dict(
        h1=init_hyena(ks[0], hyena_in, 64),
        h2=init_hyena(ks[1], 64 + hyena_in, 128),
        h3=init_hyena(ks[2], 128 + hyena_in, 256),
        head=dict(
            w1=_normal(ks[3], (256, 128)),
            b1=_normal(ks[4], (1, 128)),
            bn_gamma=1.0 + _normal(ks[5], (128,), 0.1),
            bn_beta=_normal(ks[6], (128,), 0.1),
            bn_mean=_normal(ks[7], (128,), 0.1),
            bn_var=1.0 + jnp.abs(_normal(ks[8], (128,), 0.1)),
            w2=_normal(ks[9], (128, num_class)),
            b2=_normal(ks[10], (1, num_class)),
        ),
    )


def prepare_params(p, num_class):
    """Fuse q/k/v weights, fold LN affine + BN(eval), cast weights to bf16."""
    f32, bf16 = jnp.float32, jnp.bfloat16
    assert num_class <= 128
    h1, h2, h3, hd = p["h1"], p["h2"], p["h3"], p["head"]

    def fuse_qkv(w, b):          # (3,C,D),(3,1,D) -> (C,3D),(1,3D)
        C, D = w.shape[1], w.shape[2]
        return (jnp.transpose(w, (1, 0, 2)).reshape(C, 3 * D),
                jnp.transpose(b, (1, 0, 2)).reshape(1, 3 * D))

    def fold_ln(w, b, gamma, beta, d_prev):
        # First d_prev input rows consume the previous block's LayerNorm output:
        # absorb gamma into those rows and beta into the q/k/v bias.
        w_f = w[:, :d_prev, :] * gamma[None, :, None]
        b = b + jnp.einsum("c,jcd->jd", beta, w[:, :d_prev, :])[:, None, :]
        return jnp.concatenate([w_f, w[:, d_prev:, :]], axis=1), b

    def pack_bw(hp):             # (3, D): [b_out ; w_gate ; gate_bias@col0]
        d = hp["bo"].shape[1]
        bg_row = jnp.zeros((1, d), f32).at[0, 0].set(hp["bg"][0, 0])
        return jnp.concatenate([hp["bo"], hp["wg"], bg_row], axis=0)

    W1, B1 = fuse_qkv(h1["w_qkv"], h1["b_qkv"])
    w2, b2 = fold_ln(h2["w_qkv"], h2["b_qkv"], h1["ln_gamma"], h1["ln_beta"], 64)
    W2, B2 = fuse_qkv(w2, b2)
    w3, b3 = fold_ln(h3["w_qkv"], h3["b_qkv"], h2["ln_gamma"], h2["ln_beta"], 128)
    W3, B3 = fuse_qkv(w3, b3)

    # Head: fold norm3 affine, then BatchNorm1d (eval, running stats) into fc1.
    wf1 = hd["w1"] * h3["ln_gamma"][:, None]
    bf1 = hd["b1"] + (h3["ln_beta"] @ hd["w1"])[None, :]
    s = hd["bn_gamma"] * jax.lax.rsqrt(hd["bn_var"] + 1e-5)
    t = hd["bn_beta"] - hd["bn_mean"] * s
    wf1 = wf1 * s[None, :]
    bf1 = bf1 * s[None, :] + t[None, :]
    # fc2 padded to a lane-dense 128-wide tile; padded classes biased to -1e30.
    wf2 = jnp.zeros((128, 128), f32).at[:, :num_class].set(hd["w2"])
    bf2 = jnp.full((1, 128), -1e30, f32).at[0, :num_class].set(hd["b2"][0])
    bh = jnp.concatenate([bf1, bf2], axis=0)

    w16 = lambda x: x.astype(bf16)
    v32 = lambda x: x.astype(f32)
    return [
        w16(W1), v32(B1), w16(h1["wo"]), v32(pack_bw(h1)),
        w16(W2), v32(B2), w16(h2["wo"]), v32(pack_bw(h2)),
        w16(W3), v32(B3), w16(h3["wo"]), v32(h3["bo"]),
        w16(wf1), w16(wf2), v32(bh),
    ]


# ----------------------------------------------------------------------------
# Pure-JAX references (for correctness cross-checks)
# ----------------------------------------------------------------------------

@functools.partial(jax.jit, static_argnames=("num_bands", "num_class"))
def reference_forward_prepared(x_bcn, kparams, num_bands, num_class):
    """Same fused/folded math as the kernel, in plain XLA (tight check)."""
    (W1, B1, W1o, BW1, W2, B2, W2o, BW2,
     W3, B3, W3o, B3o, Wf1, Wf2, BH) = kparams
    B, _, N = x_bcn.shape
    xyz = jnp.transpose(x_bcn, (0, 2, 1))
    pos = fourier_pos_enc(xyz.reshape(B * N, 3), num_bands).reshape(B, N, -1)

    def mm(a, w):
        return jnp.dot(a.astype(jnp.bfloat16), w, preferred_element_type=jnp.float32)

    def ln_norm(f):
        inv_d = 1.0 / f.shape[-1]
        mu = jnp.sum(f, -1, keepdims=True) * inv_d
        ex2 = jnp.sum(f * f, -1, keepdims=True) * inv_d
        return (f - mu) * jax.lax.rsqrt(ex2 - mu * mu + 1e-5)

    def block(feat, W, Bq, Wo, bo):
        d = Wo.shape[0]
        qkv = (mm(feat.reshape(B * N, -1), W) + Bq).reshape(B, N, 3 * d)
        q, k, v = qkv[..., :d], qkv[..., d:2 * d], qkv[..., 2 * d:]
        ctx = jnp.mean(k * v, axis=1, keepdims=True)
        h = q * jax.nn.sigmoid(ctx)
        return (mm(h.reshape(B * N, d), Wo) + bo).reshape(B, N, d)

    z1 = ln_norm(block(pos, W1, B1, W1o, BW1[0:1]))
    z2 = ln_norm(block(jnp.concatenate([z1, pos], -1), W2, B2, W2o, BW2[0:1]))
    z3 = ln_norm(block(jnp.concatenate([z2, pos], -1), W3, B3, W3o, B3o))
    pooled = jnp.mean(z3, axis=1)
    h = jnp.maximum(mm(pooled, Wf1) + BH[0:1], 0.0)
    logits = mm(h, Wf2) + BH[1:2]
    return jax.nn.log_softmax(logits, -1)[:, :num_class]


@functools.partial(jax.jit, static_argnames=("num_bands",))
def reference_forward(x_bcn, params, num_bands):
    """Surrogate with RAW params (validates the folding / fusion algebra)."""
    B, _, N = x_bcn.shape
    xyz = jnp.transpose(x_bcn, (0, 2, 1))
    pos = fourier_pos_enc(xyz.reshape(B * N, 3), num_bands).reshape(B, N, -1)

    def mm(a, w):
        return jnp.dot(a.astype(jnp.bfloat16), w.astype(jnp.bfloat16),
                       preferred_element_type=jnp.float32)

    def hyena(feat, hp, x_in):
        D = hp["wo"].shape[0]
        flat = feat.reshape(B * N, -1)
        q, k, v = [(mm(flat, hp["w_qkv"][j]) + hp["b_qkv"][j]).reshape(B, N, D)
                   for j in range(3)]
        ctx = jnp.mean(k * v, axis=1, keepdims=True)
        h = q * jax.nn.sigmoid(ctx)
        f_out = (mm(h.reshape(B * N, D), hp["wo"]) + hp["bo"]).reshape(B, N, D)
        gate = jax.nn.sigmoid(
            jnp.sum(f_out * hp["wg"][None], -1, keepdims=True) + hp["bg"][None])
        return jnp.maximum(x_in * gate, 0.0), f_out

    def ln(f, gamma, beta):
        mu = jnp.mean(f, -1, keepdims=True)
        var = jnp.mean((f - mu) ** 2, -1, keepdims=True)
        return (f - mu) * jax.lax.rsqrt(var + 1e-5) * gamma + beta

    h1, h2, h3, hd = params["h1"], params["h2"], params["h3"], params["head"]
    x1, f1 = hyena(pos, h1, xyz)
    f1 = ln(f1, h1["ln_gamma"], h1["ln_beta"])
    x2, f2 = hyena(jnp.concatenate([f1, pos], -1), h2, x1)
    f2 = ln(f2, h2["ln_gamma"], h2["ln_beta"])
    _, f3 = hyena(jnp.concatenate([f2, pos], -1), h3, x2)
    f3 = ln(f3, h3["ln_gamma"], h3["ln_beta"])

    pooled = jnp.mean(f3, axis=1)
    h = mm(pooled, hd["w1"]) + hd["b1"]
    h = ((h - hd["bn_mean"][None]) * jax.lax.rsqrt(hd["bn_var"][None] + 1e-5)
         * hd["bn_gamma"][None] + hd["bn_beta"][None])
    h = jnp.maximum(h, 0.0)
    logits = mm(h, hd["w2"]) + hd["b2"]
    return jax.nn.log_softmax(logits, axis=-1)


# ----------------------------------------------------------------------------
# Main
# ----------------------------------------------------------------------------

if __name__ == "__main__":
    B, N = 2, 16
    NUM_CLASS = 10
    NUM_BANDS = 4                        # small-shape version of the default (16)
    HYENA_IN = 3 + 2 * 3 * NUM_BANDS     # = 27

    key = jax.random.PRNGKey(0)
    kx, kp = jax.random.split(key)

    x = jax.random.normal(kx, (B, 3, N), jnp.float32)   # (B, C=3, N) like PyTorch
    raw_params = init_params(kp, HYENA_IN, NUM_CLASS)
    kparams = prepare_params(raw_params, NUM_CLASS)

    logp, aux = model_forward(x, kparams, num_bands=NUM_BANDS, num_class=NUM_CLASS)
    logp = jax.block_until_ready(logp)

    assert logp.shape == (B, NUM_CLASS)
    assert aux is None
    assert bool(jnp.all(jnp.isfinite(logp)))
    assert bool(jnp.allclose(jnp.sum(jnp.exp(logp), axis=-1), 1.0, atol=1e-4))

    # (1) Tight check: Pallas kernel vs the same fused/folded math in plain XLA.
    ref_p = jax.block_until_ready(reference_forward_prepared(
        x, kparams, num_bands=NUM_BANDS, num_class=NUM_CLASS))
    err_p = float(jnp.max(jnp.abs(logp - ref_p)))
    assert err_p < 2e-3, err_p

    # (2) Folding check: vs the surrogate with RAW (unfolded, unfused) params.
    #     Folding LN/BN into bf16 weights changes where bf16 rounding happens,
    #     hence the looser tolerance.
    ref_r = jax.block_until_ready(reference_forward(
        x, raw_params, num_bands=NUM_BANDS))
    err_r = float(jnp.max(jnp.abs(logp - ref_r)))
    assert err_r < 3e-2, err_r

    print("KERNEL_OK")
</pallas_src>

<mosaic_0001>
module attributes {stable_mosaic.version = 11 : i64} {
  func.func @_fused_forward_kernel(%arg0: i32, %arg1: memref<1x16x27xf32, #tpu.memory_space<vmem>>, %arg2: memref<1x16x3xf32, #tpu.memory_space<vmem>>, %arg3: memref<27x192xbf16, #tpu.memory_space<vmem>>, %arg4: memref<1x192xf32, #tpu.memory_space<vmem>>, %arg5: memref<64x64xbf16, #tpu.memory_space<vmem>>, %arg6: memref<3x64xf32, #tpu.memory_space<vmem>>, %arg7: memref<91x384xbf16, #tpu.memory_space<vmem>>, %arg8: memref<1x384xf32, #tpu.memory_space<vmem>>, %arg9: memref<128x128xbf16, #tpu.memory_space<vmem>>, %arg10: memref<3x128xf32, #tpu.memory_space<vmem>>, %arg11: memref<155x768xbf16, #tpu.memory_space<vmem>>, %arg12: memref<1x768xf32, #tpu.memory_space<vmem>>, %arg13: memref<256x256xbf16, #tpu.memory_space<vmem>>, %arg14: memref<1x256xf32, #tpu.memory_space<vmem>>, %arg15: memref<256x128xbf16, #tpu.memory_space<vmem>>, %arg16: memref<128x128xbf16, #tpu.memory_space<vmem>>, %arg17: memref<2x128xf32, #tpu.memory_space<vmem>>, %arg18: memref<1x8x128xf32, #tpu.memory_space<vmem>>) attributes {dimension_semantics = [#tpu.dimension_semantics<parallel>], iteration_bounds = array<i64: 2>, scalar_prefetch = 0 : i64, scratch_operands = 0 : i64, tpu.core_type = #tpu.core_type<tc>, window_params = [{transform_indices = @transform_0, window_bounds = array<i64: 1, 16, 27>}, {transform_indices = @transform_1, window_bounds = array<i64: 1, 16, 3>}, {pipeline_mode = #tpu.pipeline_mode<synchronous>, transform_indices = @transform_2, window_bounds = array<i64: 27, 192>}, {pipeline_mode = #tpu.pipeline_mode<synchronous>, transform_indices = @transform_3, window_bounds = array<i64: 1, 192>}, {pipeline_mode = #tpu.pipeline_mode<synchronous>, transform_indices = @transform_4, window_bounds = array<i64: 64, 64>}, {pipeline_mode = #tpu.pipeline_mode<synchronous>, transform_indices = @transform_5, window_bounds = array<i64: 3, 64>}, {pipeline_mode = #tpu.pipeline_mode<synchronous>, transform_indices = @transform_6, window_bounds = array<i64: 91, 384>}, {pipeline_mode = #tpu.pipeline_mode<synchronous>, transform_indices = @transform_7, window_bounds = array<i64: 1, 384>}, {pipeline_mode = #tpu.pipeline_mode<synchronous>, transform_indices = @transform_8, window_bounds = array<i64: 128, 128>}, {pipeline_mode = #tpu.pipeline_mode<synchronous>, transform_indices = @transform_9, window_bounds = array<i64: 3, 128>}, {pipeline_mode = #tpu.pipeline_mode<synchronous>, transform_indices = @transform_10, window_bounds = array<i64: 155, 768>}, {pipeline_mode = #tpu.pipeline_mode<synchronous>, transform_indices = @transform_11, window_bounds = array<i64: 1, 768>}, {pipeline_mode = #tpu.pipeline_mode<synchronous>, transform_indices = @transform_12, window_bounds = array<i64: 256, 256>}, {pipeline_mode = #tpu.pipeline_mode<synchronous>, transform_indices = @transform_13, window_bounds = array<i64: 1, 256>}, {pipeline_mode = #tpu.pipeline_mode<synchronous>, transform_indices = @transform_14, window_bounds = array<i64: 256, 128>}, {pipeline_mode = #tpu.pipeline_mode<synchronous>, transform_indices = @transform_15, window_bounds = array<i64: 128, 128>}, {pipeline_mode = #tpu.pipeline_mode<synchronous>, transform_indices = @transform_16, window_bounds = array<i64: 2, 128>}, {transform_indices = @transform_17, window_bounds = array<i64: 1, 8, 128>}]} {
    %c0 = arith.constant 0 : index
    %c0_0 = arith.constant 0 : index
    %c0_1 = arith.constant 0 : index
    %0 = vector.load %arg1[%c0, %c0_0, %c0_1] : memref<1x16x27xf32, #tpu.memory_space<vmem>>, vector<1x16x27xf32>
    %1 = vector.shape_cast %0 : vector<1x16x27xf32> to vector<16x27xf32>
    %2 = arith.truncf %1 : vector<16x27xf32> to vector<16x27xbf16>
    %c0_2 = arith.constant 0 : index
    %c0_3 = arith.constant 0 : index
    %3 = vector.load %arg3[%c0_2, %c0_3] : memref<27x192xbf16, #tpu.memory_space<vmem>>, vector<27x192xbf16>
    %cst = arith.constant dense<0.000000e+00> : vector<16x192xf32>
    %4 = tpu.matmul %2, %3, %cst {dimension_numbers = #tpu.dot_dimension_numbers<[1], [0], [0], [1], [0, 0, 1, 1], [], []>} : vector<16x27xbf16>, vector<27x192xbf16>, vector<16x192xf32> -> vector<16x192xf32>
    %c0_4 = arith.constant 0 : index
    %c0_5 = arith.constant 0 : index
    %5 = vector.load %arg4[%c0_4, %c0_5] : memref<1x192xf32, #tpu.memory_space<vmem>>, vector<1x192xf32>
    %6 = vector.broadcast %5 : vector<1x192xf32> to vector<16x192xf32>
    %7 = arith.addf %4, %6 : vector<16x192xf32>
    %8 = vector.extract_strided_slice %7 {offsets = [0, 0], sizes = [16, 64], strides = [1, 1]} : vector<16x192xf32> to vector<16x64xf32>
    %9 = vector.extract_strided_slice %7 {offsets = [0, 64], sizes = [16, 64], strides = [1, 1]} : vector<16x192xf32> to vector<16x64xf32>
    %10 = vector.extract_strided_slice %7 {offsets = [0, 128], sizes = [16, 64], strides = [1, 1]} : vector<16x192xf32> to vector<16x64xf32>
    %11 = arith.mulf %9, %10 : vector<16x64xf32>
    %cst_6 = arith.constant dense<0.000000e+00> : vector<64xf32>
    %12 = vector.multi_reduction <add>, %11, %cst_6 [0] : vector<16x64xf32> to vector<64xf32>
    %13 = vector.shape_cast %12 : vector<64xf32> to vector<1x64xf32>
    %cst_7 = arith.constant 1.600000e+01 : f32
    %14 = vector.broadcast %cst_7 : f32 to vector<1x64xf32>
    %15 = arith.divf %13, %14 : vector<1x64xf32>
    %16 = arith.negf %15 : vector<1x64xf32>
    %17 = math.exp %16 : vector<1x64xf32>
    %cst_8 = arith.constant 1.000000e+00 : f32
    %18 = vector.broadcast %cst_8 : f32 to vector<1x64xf32>
    %19 = arith.addf %18, %17 : vector<1x64xf32>
    %20 = arith.divf %18, %19 : vector<1x64xf32>
    %21 = vector.broadcast %20 : vector<1x64xf32> to vector<16x64xf32>
    %22 = arith.mulf %8, %21 : vector<16x64xf32>
    %23 = arith.truncf %22 : vector<16x64xf32> to vector<16x64xbf16>
    %c0_9 = arith.constant 0 : index
    %c0_10 = arith.constant 0 : index
    %24 = vector.load %arg5[%c0_9, %c0_10] : memref<64x64xbf16, #tpu.memory_space<vmem>>, vector<64x64xbf16>
    %cst_11 = arith.constant dense<0.000000e+00> : vector<16x64xf32>
    %25 = tpu.matmul %23, %24, %cst_11 {dimension_numbers = #tpu.dot_dimension_numbers<[1], [0], [0], [1], [0, 0, 1, 1], [], []>} : vector<16x64xbf16>, vector<64x64xbf16>, vector<16x64xf32> -> vector<16x64xf32>
    %c0_12 = arith.constant 0 : index
    %c0_13 = arith.constant 0 : index
    %26 = vector.load %arg6[%c0_12, %c0_13] : memref<3x64xf32, #tpu.memory_space<vmem>>, vector<1x64xf32>
    %27 = vector.broadcast %26 : vector<1x64xf32> to vector<16x64xf32>
    %28 = arith.addf %25, %27 : vector<16x64xf32>
    %cst_14 = arith.constant dense<0.000000e+00> : vector<16xf32>
    %29 = vector.multi_reduction <add>, %28, %cst_14 [1] : vector<16x64xf32> to vector<16xf32>
    %30 = vector.shape_cast %29 : vector<16xf32> to vector<16x1xf32>
    %cst_15 = arith.constant 1.562500e-02 : f32
    %31 = vector.broadcast %cst_15 : f32 to vector<16x1xf32>
    %32 = arith.mulf %30, %31 : vector<16x1xf32>
    %33 = arith.mulf %28, %28 : vector<16x64xf32>
    %cst_16 = arith.constant dense<0.000000e+00> : vector<16xf32>
    %34 = vector.multi_reduction <add>, %33, %cst_16 [1] : vector<16x64xf32> to vector<16xf32>
    %35 = vector.shape_cast %34 : vector<16xf32> to vector<16x1xf32>
    %cst_17 = arith.constant 1.562500e-02 : f32
    %36 = vector.broadcast %cst_17 : f32 to vector<16x1xf32>
    %37 = arith.mulf %35, %36 : vector<16x1xf32>
    %38 = vector.broadcast %32 : vector<16x1xf32> to vector<16x64xf32>
    %39 = arith.subf %28, %38 : vector<16x64xf32>
    %40 = arith.mulf %32, %32 : vector<16x1xf32>
    %41 = arith.subf %37, %40 : vector<16x1xf32>
    %cst_18 = arith.constant 9.99999974E-6 : f32
    %42 = vector.broadcast %cst_18 : f32 to vector<16x1xf32>
    %43 = arith.addf %41, %42 : vector<16x1xf32>
    %44 = math.rsqrt %43 : vector<16x1xf32>
    %45 = vector.broadcast %44 : vector<16x1xf32> to vector<16x64xf32>
    %46 = arith.mulf %39, %45 : vector<16x64xf32>
    %47 = tpu.concatenate %46, %1 in 1 : vector<16x64xf32>, vector<16x27xf32> -> vector<16x91xf32>
    %48 = arith.truncf %47 : vector<16x91xf32> to vector<16x91xbf16>
    %c0_19 = arith.constant 0 : index
    %c0_20 = arith.constant 0 : index
    %49 = vector.load %arg7[%c0_19, %c0_20] : memref<91x384xbf16, #tpu.memory_space<vmem>>, vector<91x384xbf16>
    %cst_21 = arith.constant dense<0.000000e+00> : vector<16x384xf32>
    %50 = tpu.matmul %48, %49, %cst_21 {dimension_numbers = #tpu.dot_dimension_numbers<[1], [0], [0], [1], [0, 0, 1, 1], [], []>} : vector<16x91xbf16>, vector<91x384xbf16>, vector<16x384xf32> -> vector<16x384xf32>
    %c0_22 = arith.constant 0 : index
    %c0_23 = arith.constant 0 : index
    %51 = vector.load %arg8[%c0_22, %c0_23] : memref<1x384xf32, #tpu.memory_space<vmem>>, vector<1x384xf32>
    %52 = vector.broadcast %51 : vector<1x384xf32> to vector<16x384xf32>
    %53 = arith.addf %50, %52 : vector<16x384xf32>
    %54 = vector.extract_strided_slice %53 {offsets = [0, 0], sizes = [16, 128], strides = [1, 1]} : vector<16x384xf32> to vector<16x128xf32>
    %55 = vector.extract_strided_slice %53 {offsets = [0, 128], sizes = [16, 128], strides = [1, 1]} : vector<16x384xf32> to vector<16x128xf32>
    %56 = vector.extract_strided_slice %53 {offsets = [0, 256], sizes = [16, 128], strides = [1, 1]} : vector<16x384xf32> to vector<16x128xf32>
    %57 = arith.mulf %55, %56 : vector<16x128xf32>
    %cst_24 = arith.constant dense<0.000000e+00> : vector<128xf32>
    %58 = vector.multi_reduction <add>, %57, %cst_24 [0] : vector<16x128xf32> to vector<128xf32>
    %59 = vector.shape_cast %58 : vector<128xf32> to vector<1x128xf32>
    %cst_25 = arith.constant 1.600000e+01 : f32
    %60 = vector.broadcast %cst_25 : f32 to vector<1x128xf32>
    %61 = arith.divf %59, %60 : vector<1x128xf32>
    %62 = arith.negf %61 : vector<1x128xf32>
    %63 = math.exp %62 : vector<1x128xf32>
    %cst_26 = arith.constant 1.000000e+00 : f32
    %64 = vector.broadcast %cst_26 : f32 to vector<1x128xf32>
    %65 = arith.addf %64, %63 : vector<1x128xf32>
    %66 = arith.divf %64, %65 : vector<1x128xf32>
    %67 = vector.broadcast %66 : vector<1x128xf32> to vector<16x128xf32>
    %68 = arith.mulf %54, %67 : vector<16x128xf32>
    %69 = arith.truncf %68 : vector<16x128xf32> to vector<16x128xbf16>
    %c0_27 = arith.constant 0 : index
    %c0_28 = arith.constant 0 : index
    %70 = vector.load %arg9[%c0_27, %c0_28] : memref<128x128xbf16, #tpu.memory_space<vmem>>, vector<128x128xbf16>
    %cst_29 = arith.constant dense<0.000000e+00> : vector<16x128xf32>
    %71 = tpu.matmul %69, %70, %cst_29 {dimension_numbers = #tpu.dot_dimension_numbers<[1], [0], [0], [1], [0, 0, 1, 1], [], []>} : vector<16x128xbf16>, vector<128x128xbf16>, vector<16x128xf32> -> vector<16x128xf32>
    %c0_30 = arith.constant 0 : index
    %c0_31 = arith.constant 0 : index
    %72 = vector.load %arg10[%c0_30, %c0_31] : memref<3x128xf32, #tpu.memory_space<vmem>>, vector<1x128xf32>
    %73 = vector.broadcast %72 : vector<1x128xf32> to vector<16x128xf32>
    %74 = arith.addf %71, %73 : vector<16x128xf32>
    %cst_32 = arith.constant dense<0.000000e+00> : vector<16xf32>
    %75 = vector.multi_reduction <add>, %74, %cst_32 [1] : vector<16x128xf32> to vector<16xf32>
    %76 = vector.shape_cast %75 : vector<16xf32> to vector<16x1xf32>
    %cst_33 = arith.constant 7.812500e-03 : f32
    %77 = vector.broadcast %cst_33 : f32 to vector<16x1xf32>
    %78 = arith.mulf %76, %77 : vector<16x1xf32>
    %79 = arith.mulf %74, %74 : vector<16x128xf32>
    %cst_34 = arith.constant dense<0.000000e+00> : vector<16xf32>
    %80 = vector.multi_reduction <add>, %79, %cst_34 [1] : vector<16x128xf32> to vector<16xf32>
    %81 = vector.shape_cast %80 : vector<16xf32> to vector<16x1xf32>
    %cst_35 = arith.constant 7.812500e-03 : f32
    %82 = vector.broadcast %cst_35 : f32 to vector<16x1xf32>
    %83 = arith.mulf %81, %82 : vector<16x1xf32>
    %84 = vector.broadcast %78 : vector<16x1xf32> to vector<16x128xf32>
    %85 = arith.subf %74, %84 : vector<16x128xf32>
    %86 = arith.mulf %78, %78 : vector<16x1xf32>
    %87 = arith.subf %83, %86 : vector<16x1xf32>
    %cst_36 = arith.constant 9.99999974E-6 : f32
    %88 = vector.broadcast %cst_36 : f32 to vector<16x1xf32>
    %89 = arith.addf %87, %88 : vector<16x1xf32>
    %90 = math.rsqrt %89 : vector<16x1xf32>
    %91 = vector.broadcast %90 : vector<16x1xf32> to vector<16x128xf32>
    %92 = arith.mulf %85, %91 : vector<16x128xf32>
    %93 = tpu.concatenate %92, %1 in 1 : vector<16x128xf32>, vector<16x27xf32> -> vector<16x155xf32>
    %94 = arith.truncf %93 : vector<16x155xf32> to vector<16x155xbf16>
    %c0_37 = arith.constant 0 : index
    %c0_38 = arith.constant 0 : index
    %95 = vector.load %arg11[%c0_37, %c0_38] : memref<155x768xbf16, #tpu.memory_space<vmem>>, vector<155x768xbf16>
    %cst_39 = arith.constant dense<0.000000e+00> : vector<16x768xf32>
    %96 = tpu.matmul %94, %95, %cst_39 {dimension_numbers = #tpu.dot_dimension_numbers<[1], [0], [0], [1], [0, 0, 1, 1], [], []>} : vector<16x155xbf16>, vector<155x768xbf16>, vector<16x768xf32> -> vector<16x768xf32>
    %c0_40 = arith.constant 0 : index
    %c0_41 = arith.constant 0 : index
    %97 = vector.load %arg12[%c0_40, %c0_41] : memref<1x768xf32, #tpu.memory_space<vmem>>, vector<1x768xf32>
    %98 = vector.broadcast %97 : vector<1x768xf32> to vector<16x768xf32>
    %99 = arith.addf %96, %98 : vector<16x768xf32>
    %100 = vector.extract_strided_slice %99 {offsets = [0, 0], sizes = [16, 256], strides = [1, 1]} : vector<16x768xf32> to vector<16x256xf32>
    %101 = vector.extract_strided_slice %99 {offsets = [0, 256], sizes = [16, 256], strides = [1, 1]} : vector<16x768xf32> to vector<16x256xf32>
    %102 = vector.extract_strided_slice %99 {offsets = [0, 512], sizes = [16, 256], strides = [1, 1]} : vector<16x768xf32> to vector<16x256xf32>
    %103 = arith.mulf %101, %102 : vector<16x256xf32>
    %cst_42 = arith.constant dense<0.000000e+00> : vector<256xf32>
    %104 = vector.multi_reduction <add>, %103, %cst_42 [0] : vector<16x256xf32> to vector<256xf32>
    %105 = vector.shape_cast %104 : vector<256xf32> to vector<1x256xf32>
    %cst_43 = arith.constant 1.600000e+01 : f32
    %106 = vector.broadcast %cst_43 : f32 to vector<1x256xf32>
    %107 = arith.divf %105, %106 : vector<1x256xf32>
    %108 = arith.negf %107 : vector<1x256xf32>
    %109 = math.exp %108 : vector<1x256xf32>
    %cst_44 = arith.constant 1.000000e+00 : f32
    %110 = vector.broadcast %cst_44 : f32 to vector<1x256xf32>
    %111 = arith.addf %110, %109 : vector<1x256xf32>
    %112 = arith.divf %110, %111 : vector<1x256xf32>
    %113 = vector.broadcast %112 : vector<1x256xf32> to vector<16x256xf32>
    %114 = arith.mulf %100, %113 : vector<16x256xf32>
    %115 = arith.truncf %114 : vector<16x256xf32> to vector<16x256xbf16>
    %c0_45 = arith.constant 0 : index
    %c0_46 = arith.constant 0 : index
    %116 = vector.load %arg13[%c0_45, %c0_46] : memref<256x256xbf16, #tpu.memory_space<vmem>>, vector<256x256xbf16>
    %cst_47 = arith.constant dense<0.000000e+00> : vector<16x256xf32>
    %117 = tpu.matmul %115, %116, %cst_47 {dimension_numbers = #tpu.dot_dimension_numbers<[1], [0], [0], [1], [0, 0, 1, 1], [], []>} : vector<16x256xbf16>, vector<256x256xbf16>, vector<16x256xf32> -> vector<16x256xf32>
    %c0_48 = arith.constant 0 : index
    %c0_49 = arith.constant 0 : index
    %118 = vector.load %arg14[%c0_48, %c0_49] : memref<1x256xf32, #tpu.memory_space<vmem>>, vector<1x256xf32>
    %119 = vector.broadcast %118 : vector<1x256xf32> to vector<16x256xf32>
    %120 = arith.addf %117, %119 : vector<16x256xf32>
    %cst_50 = arith.constant dense<0.000000e+00> : vector<16xf32>
    %121 = vector.multi_reduction <add>, %120, %cst_50 [1] : vector<16x256xf32> to vector<16xf32>
    %122 = vector.shape_cast %121 : vector<16xf32> to vector<16x1xf32>
    %cst_51 = arith.constant 3.906250e-03 : f32
    %123 = vector.broadcast %cst_51 : f32 to vector<16x1xf32>
    %124 = arith.mulf %122, %123 : vector<16x1xf32>
    %125 = arith.mulf %120, %120 : vector<16x256xf32>
    %cst_52 = arith.constant dense<0.000000e+00> : vector<16xf32>
    %126 = vector.multi_reduction <add>, %125, %cst_52 [1] : vector<16x256xf32> to vector<16xf32>
    %127 = vector.shape_cast %126 : vector<16xf32> to vector<16x1xf32>
    %cst_53 = arith.constant 3.906250e-03 : f32
    %128 = vector.broadcast %cst_53 : f32 to vector<16x1xf32>
    %129 = arith.mulf %127, %128 : vector<16x1xf32>
    %130 = vector.broadcast %124 : vector<16x1xf32> to vector<16x256xf32>
    %131 = arith.subf %120, %130 : vector<16x256xf32>
    %132 = arith.mulf %124, %124 : vector<16x1xf32>
    %133 = arith.subf %129, %132 : vector<16x1xf32>
    %cst_54 = arith.constant 9.99999974E-6 : f32
    %134 = vector.broadcast %cst_54 : f32 to vector<16x1xf32>
    %135 = arith.addf %133, %134 : vector<16x1xf32>
    %136 = math.rsqrt %135 : vector<16x1xf32>
    %137 = vector.broadcast %136 : vector<16x1xf32> to vector<16x256xf32>
    %138 = arith.mulf %131, %137 : vector<16x256xf32>
    %cst_55 = arith.constant dense<0.000000e+00> : vector<256xf32>
    %139 = vector.multi_reduction <add>, %138, %cst_55 [0] : vector<16x256xf32> to vector<256xf32>
    %140 = vector.shape_cast %139 : vector<256xf32> to vector<1x256xf32>
    %cst_56 = arith.constant 1.600000e+01 : f32
    %141 = vector.broadcast %cst_56 : f32 to vector<1x256xf32>
    %142 = arith.divf %140, %141 : vector<1x256xf32>
    %143 = arith.truncf %142 : vector<1x256xf32> to vector<1x256xbf16>
    %c0_57 = arith.constant 0 : index
    %c0_58 = arith.constant 0 : index
    %144 = vector.load %arg15[%c0_57, %c0_58] : memref<256x128xbf16, #tpu.memory_space<vmem>>, vector<256x128xbf16>
    %cst_59 = arith.constant dense<0.000000e+00> : vector<1x128xf32>
    %145 = tpu.matmul %143, %144, %cst_59 {dimension_numbers = #tpu.dot_dimension_numbers<[1], [0], [0], [1], [0, 0, 1, 1], [], []>} : vector<1x256xbf16>, vector<256x128xbf16>, vector<1x128xf32> -> vector<1x128xf32>
    %c0_60 = arith.constant 0 : index
    %c0_61 = arith.constant 0 : index
    %146 = vector.load %arg17[%c0_60, %c0_61] : memref<2x128xf32, #tpu.memory_space<vmem>>, vector<1x128xf32>
    %147 = arith.addf %145, %146 : vector<1x128xf32>
    %cst_62 = arith.constant 0.000000e+00 : f32
    %148 = vector.broadcast %cst_62 : f32 to vector<1x128xf32>
    %149 = arith.maximumf %147, %148 : vector<1x128xf32>
    %150 = arith.truncf %149 : vector<1x128xf32> to vector<1x128xbf16>
    %c0_63 = arith.constant 0 : index
    %c0_64 = arith.constant 0 : index
    %151 = vector.load %arg16[%c0_63, %c0_64] : memref<128x128xbf16, #tpu.memory_space<vmem>>, vector<128x128xbf16>
    %cst_65 = arith.constant dense<0.000000e+00> : vector<1x128xf32>
    %152 = tpu.matmul %150, %151, %cst_65 {dimension_numbers = #tpu.dot_dimension_numbers<[1], [0], [0], [1], [0, 0, 1, 1], [], []>} : vector<1x128xbf16>, vector<128x128xbf16>, vector<1x128xf32> -> vector<1x128xf32>
    %c1 = arith.constant 1 : index
    %c0_66 = arith.constant 0 : index
    %153 = vector.load %arg17[%c1, %c0_66] : memref<2x128xf32, #tpu.memory_space<vmem>>, vector<1x128xf32>
    %154 = arith.addf %152, %153 : vector<1x128xf32>
    %cst_67 = arith.constant dense<0xFF800000> : vector<1xf32>
    %155 = vector.multi_reduction <maximumf>, %154, %cst_67 [1] : vector<1x128xf32> to vector<1xf32>
    %156 = vector.shape_cast %155 : vector<1xf32> to vector<1x1xf32>
    %157 = vector.broadcast %156 : vector<1x1xf32> to vector<1x128xf32>
    %158 = arith.subf %154, %157 : vector<1x128xf32>
    %159 = math.exp %158 : vector<1x128xf32>
    %cst_68 = arith.constant dense<0.000000e+00> : vector<1xf32>
    %160 = vector.multi_reduction <add>, %159, %cst_68 [1] : vector<1x128xf32> to vector<1xf32>
    %161 = vector.shape_cast %160 : vector<1xf32> to vector<1x1xf32>
    %162 = math.log %161 : vector<1x1xf32>
    %163 = vector.broadcast %162 : vector<1x1xf32> to vector<1x128xf32>
    %164 = arith.subf %158, %163 : vector<1x128xf32>
    %165 = vector.shape_cast %164 : vector<1x128xf32> to vector<1x1x128xf32>
    %166 = vector.shape_cast %165 : vector<1x1x128xf32> to vector<1x1x128xf32>
    %167 = vector.broadcast %166 : vector<1x1x128xf32> to vector<1x8x128xf32>
    %c0_69 = arith.constant 0 : index
    %c0_70 = arith.constant 0 : index
    %c0_71 = arith.constant 0 : index
    %168 = vector.load %arg18[%c0_69, %c0_70, %c0_71] : memref<1x8x128xf32, #tpu.memory_space<vmem>>, vector<1x8x128xf32>
    tpu.vector_store %arg18[%c0_69, %c0_70, %c0_71], %167 {strides = array<i32>} : memref<1x8x128xf32, #tpu.memory_space<vmem>>, vector<1x8x128xf32>,
    return
  }
  func.func @transform_0(%arg0: i32) -> (i32, i32, i32) {
    %c0_i32 = arith.constant 0 : i32
    %c0_i32_0 = arith.constant 0 : i32
    %c0_i32_1 = arith.constant 0 : i32
    return %arg0, %c0_i32, %c0_i32_0 : i32, i32, i32
  }
  func.func @transform_1(%arg0: i32) -> (i32, i32, i32) {
    %c0_i32 = arith.constant 0 : i32
    %c0_i32_0 = arith.constant 0 : i32
    %c0_i32_1 = arith.constant 0 : i32
    return %arg0, %c0_i32, %c0_i32_0 : i32, i32, i32
  }
  func.func @transform_2(%arg0: i32) -> (i32, i32) {
    %c0_i32 = arith.constant 0 : i32
    %c0_i32_0 = arith.constant 0 : i32
    %c0_i32_1 = arith.constant 0 : i32
    return %c0_i32, %c0_i32_0 : i32, i32
  }
  func.func @transform_3(%arg0: i32) -> (i32, i32) {
    %c0_i32 = arith.constant 0 : i32
    %c0_i32_0 = arith.constant 0 : i32
    %c0_i32_1 = arith.constant 0 : i32
    return %c0_i32, %c0_i32_0 : i32, i32
  }
  func.func @transform_4(%arg0: i32) -> (i32, i32) {
    %c0_i32 = arith.constant 0 : i32
    %c0_i32_0 = arith.constant 0 : i32
    %c0_i32_1 = arith.constant 0 : i32
    return %c0_i32, %c0_i32_0 : i32, i32
  }
  func.func @transform_5(%arg0: i32) -> (i32, i32) {
    %c0_i32 = arith.constant 0 : i32
    %c0_i32_0 = arith.constant 0 : i32
    %c0_i32_1 = arith.constant 0 : i32
    return %c0_i32, %c0_i32_0 : i32, i32
  }
  func.func @transform_6(%arg0: i32) -> (i32, i32) {
    %c0_i32 = arith.constant 0 : i32
    %c0_i32_0 = arith.constant 0 : i32
    %c0_i32_1 = arith.constant 0 : i32
    return %c0_i32, %c0_i32_0 : i32, i32
  }
  func.func @transform_7(%arg0: i32) -> (i32, i32) {
    %c0_i32 = arith.constant 0 : i32
    %c0_i32_0 = arith.constant 0 : i32
    %c0_i32_1 = arith.constant 0 : i32
    return %c0_i32, %c0_i32_0 : i32, i32
  }
  func.func @transform_8(%arg0: i32) -> (i32, i32) {
    %c0_i32 = arith.constant 0 : i32
    %c0_i32_0 = arith.constant 0 : i32
    %c0_i32_1 = arith.constant 0 : i32
    return %c0_i32, %c0_i32_0 : i32, i32
  }
  func.func @transform_9(%arg0: i32) -> (i32, i32) {
    %c0_i32 = arith.constant 0 : i32
    %c0_i32_0 = arith.constant 0 : i32
    %c0_i32_1 = arith.constant 0 : i32
    return %c0_i32, %c0_i32_0 : i32, i32
  }
  func.func @transform_10(%arg0: i32) -> (i32, i32) {
    %c0_i32 = arith.constant 0 : i32
    %c0_i32_0 = arith.constant 0 : i32
    %c0_i32_1 = arith.constant 0 : i32
    return %c0_i32, %c0_i32_0 : i32, i32
  }
  func.func @transform_11(%arg0: i32) -> (i32, i32) {
    %c0_i32 = arith.constant 0 : i32
    %c0_i32_0 = arith.constant 0 : i32
    %c0_i32_1 = arith.constant 0 : i32
    return %c0_i32, %c0_i32_0 : i32, i32
  }
  func.func @transform_12(%arg0: i32) -> (i32, i32) {
    %c0_i32 = arith.constant 0 : i32
    %c0_i32_0 = arith.constant 0 : i32
    %c0_i32_1 = arith.constant 0 : i32
    return %c0_i32, %c0_i32_0 : i32, i32
  }
  func.func @transform_13(%arg0: i32) -> (i32, i32) {
    %c0_i32 = arith.constant 0 : i32
    %c0_i32_0 = arith.constant 0 : i32
    %c0_i32_1 = arith.constant 0 : i32
    return %c0_i32, %c0_i32_0 : i32, i32
  }
  func.func @transform_14(%arg0: i32) -> (i32, i32) {
    %c0_i32 = arith.constant 0 : i32
    %c0_i32_0 = arith.constant 0 : i32
    %c0_i32_1 = arith.constant 0 : i32
    return %c0_i32, %c0_i32_0 : i32, i32
  }
  func.func @transform_15(%arg0: i32) -> (i32, i32) {
    %c0_i32 = arith.constant 0 : i32
    %c0_i32_0 = arith.constant 0 : i32
    %c0_i32_1 = arith.constant 0 : i32
    return %c0_i32, %c0_i32_0 : i32, i32
  }
  func.func @transform_16(%arg0: i32) -> (i32, i32) {
    %c0_i32 = arith.constant 0 : i32
    %c0_i32_0 = arith.constant 0 : i32
    %c0_i32_1 = arith.constant 0 : i32
    return %c0_i32, %c0_i32_0 : i32, i32
  }
  func.func @transform_17(%arg0: i32) -> (i32, i32, i32) {
    %c0_i32 = arith.constant 0 : i32
    %c0_i32_0 = arith.constant 0 : i32
    %c0_i32_1 = arith.constant 0 : i32
    return %arg0, %c0_i32, %c0_i32_0 : i32, i32, i32
  }
}

</mosaic_0001>

<bundles_post_ra>
// kernel: model_forward.1
= control target key start
LH: loop header
LB: loop body
LE: loop exit
PB: predicated region body
PF: predicated region fallthrough
CT: control target
= control target key end

     0   :  { %s4753_s0 = inlined_call_operand.vmem [shape: f32[2,16,27], index: 0, kind: input, shape index: {}]   ;;  %s4754_s1 = inlined_call_operand.vmem [shape: f32[2,16,3], index: 1, kind: input, shape index: {}]   ;;  %s4755_s2 = inlined_call_operand.vmem [shape: bf16[27,192], index: 2, kind: input, shape index: {}]   ;;  %s4756_s3 = inlined_call_operand.hbm [shape: f32[1,192], index: 3, kind: input, shape index: {}]   ;;  %s4757_s4 = inlined_call_operand.hbm [shape: bf16[64,64], index: 4, kind: input, shape index: {}]   ;;  %s4758_s5 = inlined_call_operand.hbm [shape: f32[3,64], index: 5, kind: input, shape index: {}]   ;;  %s4759_s6 = inlined_call_operand.vmem [shape: bf16[91,384], index: 6, kind: input, shape index: {}]   ;;  %s4760_s7 = inlined_call_operand.vmem [shape: f32[1,384], index: 7, kind: input, shape index: {}]   ;;  %s4761_s8 = inlined_call_operand.hbm [shape: bf16[128,128], index: 8, kind: input, shape index: {}]   ;;  %s4762_s9 = inlined_call_operand.hbm [shape: f32[3,128], index: 9, kind: input, shape index: {}]   ;;  %s4763_s10 = inlined_call_operand.hbm [shape: bf16[155,768], index: 10, kind: input, shape index: {}]   ;;  %s4764_s11 = inlined_call_operand.hbm [shape: f32[1,768], index: 11, kind: input, shape index: {}]   ;;  %s4765_s12 = inlined_call_operand.vmem [shape: bf16[256,256], index: 12, kind: input, shape index: {}]   ;;  %s4766_s13 = inlined_call_operand.hbm [shape: f32[1,256], index: 13, kind: input, shape index: {}]   ;;  %s4767_s14 = inlined_call_operand.hbm [shape: bf16[256,128], index: 14, kind: input, shape index: {}]   ;;  %s4768_s15 = inlined_call_operand.hbm [shape: bf16[128,128], index: 15, kind: input, shape index: {}]   ;;  %s4769_s16 = inlined_call_operand.hbm [shape: f32[2,128], index: 16, kind: input, shape index: {}]   ;;  %s4770_s17 = inlined_call_operand.vmem [shape: f32[2,8,128], index: 17, kind: output, shape index: {}]  }
   0x1   :  { %4776 = sst [smem:[#allocation26_spill]] %s4753_s0 }
   0x2   :  { %4777 = sst [smem:[#allocation27_spill]] %s4757_s4 }
   0x3   :  { %4778 = sst [smem:[#allocation28_spill]] %s4761_s8 }
   0x4   :  { %4779 = sst [smem:[#allocation29_spill]] %s4763_s10 }
   0x5   :  { %22 = vsyncpa [#allocation3], 0 }
   0x6   :  { %23 = vsyncpa [#allocation5], 0 }
   0x7   :  { %24 = vsyncpa [#allocation8], 0 }
   0x8   :  { %25 = vsyncpa [#allocation11], 0 }
   0x9   :  { %26 = vsyncpa [#allocation14], 0 }
   0xa   :  { %27 = vsyncpa [#allocation17], 0  ;;  %s4115_s24 = smov 0  }
   0xb LB: > { %4780 = sst [smem:[#allocation25_spill]] %s4005_s24  ;;  %s4124_s28 = sadd.s32 4294967295, %s4005_s24   ;;  %s4005_s24 = sphi %s4115_s24, %s33_s24  }
   0xc   : > { %s4781_s4 = sld [smem:[#allocation27_spill]]  ;;  %p2681_p0 = scmp.ge.s32.totalorder %s4005_s24, 1 }
   0xd   : > { %p431_p1 = scmp.lt.s32.totalorder %s4005_s24, 3  ;;  %p3556_p2 = scmp.eq.s32.totalorder %s4124_s28, 0 }
   0xe   : > { %s4007_s0 = smov [#allocation4]   ;;  %s4783_s8 = sld [smem:[#allocation28_spill]] }
   0xf   : > { %p4129_p3 = pnand %p2681_p0, %p431_p1  ;;  %s459_s30 = sshll.u32 %s4007_s0, 4  ;;  %s460_s30 = int_to_ptr.vmem [resolvable:$true] %s459_s30 }
  0x10   : > { %s4008_s21 = smov [#allocation7]   ;;  %s4785_s10 = sld [smem:[#allocation29_spill]] }
  0x11   : > { %p3522_p4 = pneg %p4129_p3  ;;  %s491_s22 = sshll.u32 %s4008_s21, 4  ;;  %s492_s22 = int_to_ptr.vmem [resolvable:$true] %s491_s22 }
  0x12   : > { %s457_s27 = sshll.u32 %s4781_s4, 4  ;;  %s4772_s0 = smov 64   ;;  %s458_s27 = int_to_ptr.hbm [resolvable:$true] %s457_s27 }
  0x13   : > { %p4140_p5 = pnand %p3556_p2, %p3522_p4  ;;  %s4774_s4 = smov 4  }
  0x14   : > { %s489_s1 = sshll.u32 %s4783_s8, 4  ;;  %s4011_s18 = smov [#allocation10]   ;;  %s490_s1 = int_to_ptr.hbm [resolvable:$true] %s489_s1 }
  0x15   : > { %3528 = dma.hbm_to_vmem [thread:$0]  (!%p4140_p5), %s458_s27, 512, %s460_s30, [#allocation5], %s4772_s0, %s4772_s0, %s4774_s4  }
  0x16   : > { %s515_s26 = sshll.u32 %s4785_s10, 4  ;;  %s517_s19 = sshll.u32 %s4011_s18, 4  ;;  %s516_s26 = int_to_ptr.hbm [resolvable:$true] %s515_s26  ;;  %s518_s19 = int_to_ptr.vmem [resolvable:$true] %s517_s19 }
  0x17   : > { %3534 = dma.hbm_to_vmem [thread:$0]  (!%p4140_p5), %s490_s1, 1024, %s492_s22, [#allocation8], %s4772_s0, %s4772_s0, %s4774_s4  }
  0x18   : > { %s4012_s21 = smov 384   ;;  %s4013_s23 = smov 24  }
  0x19   : > { %3540 = dma.hbm_to_vmem [thread:$0]  (!%p4140_p5), %s516_s26, 7680, %s518_s19, [#allocation11], %s4012_s21, %s4012_s21, %s4013_s23  }
  0x1a   : > { %s545_s10 = sshll.u32 %s4766_s13, 4  ;;  %s4014_s27 = smov [#allocation13]   ;;  %s546_s10 = int_to_ptr.hbm [resolvable:$true] %s545_s10 }
  0x1b   : > { %s547_s30 = sshll.u32 %s4014_s27, 4  ;;  %s570_s22 = sshll.u32 %s4768_s15, 4  ;;  %s548_s30 = int_to_ptr.vmem [resolvable:$true] %s547_s30  ;;  %s571_s22 = int_to_ptr.hbm [resolvable:$true] %s570_s22 }
  0x1c   : > { %3546 = dma.hbm_to_vmem [thread:$0]  (!%p4140_p5), %s546_s10, 32, %s548_s30, [#allocation14]  }
  0x1d   : > { %s4015_s18 = smov [#allocation16]   ;;  %s446_s8 = sshll.u32 %s4756_s3, 4  ;;  %s447_s8 = int_to_ptr.hbm [resolvable:$true] %s446_s8 }
  0x1e   : > { %s572_s0 = sshll.u32 %s4015_s18, 4  ;;  %s4786_s19 = smov 4   ;;  %s573_s0 = int_to_ptr.vmem [resolvable:$true] %s572_s0 }
  0x1f   : > { %s4787_s21 = smov 64   ;;  %s472_s25 = sshll.u32 %s4758_s5, 4  ;;  %s473_s25 = int_to_ptr.hbm [resolvable:$true] %s472_s25 }
  0x20   : > { %3552 = dma.hbm_to_vmem [thread:$0]  (!%p4140_p5), %s571_s22, 1024, %s573_s0, [#allocation17], %s4787_s21, %s4787_s21, %s4786_s19  }
  0x21   : > { %s4016_s10 = smov [#allocation2]   ;;  %s4017_s4 = smov [#allocation6]  }
  0x22   : > { %s448_s27 = sshll.u32 %s4016_s10, 4  ;;  %s474_s30 = sshll.u32 %s4017_s4, 4  ;;  %s449_s27 = int_to_ptr.vmem [resolvable:$true] %s448_s27  ;;  %s475_s30 = int_to_ptr.vmem [resolvable:$true] %s474_s30 }
  0x23   : > { %3525 = dma.hbm_to_vmem [thread:$0]  (!%p4140_p5), %s447_s8, 32, %s449_s27, [#allocation3]  }
  0x24   : > { %s504_s26 = sshll.u32 %s4762_s9, 4  ;;  %s530_s23 = sshll.u32 %s4764_s11, 4  ;;  %s505_s26 = int_to_ptr.hbm [resolvable:$true] %s504_s26  ;;  %s531_s23 = int_to_ptr.hbm [resolvable:$true] %s530_s23 }
  0x25   : > { %3531 = dma.hbm_to_vmem [thread:$0]  (!%p4140_p5), %s473_s25, 64, %s475_s30, [#allocation5]  }
  0x26   : > { %s4018_s24 = smov [#allocation9]   ;;  %s4019_s8 = smov [#allocation12]  }
  0x27   : > { %s506_s10 = sshll.u32 %s4018_s24, 4  ;;  %s532_s27 = sshll.u32 %s4019_s8, 4  ;;  %s507_s10 = int_to_ptr.vmem [resolvable:$true] %s506_s10  ;;  %s533_s27 = int_to_ptr.vmem [resolvable:$true] %s532_s27 }
  0x28   : > { %3537 = dma.hbm_to_vmem [thread:$0]  (!%p4140_p5), %s505_s26, 64, %s507_s10, [#allocation8]  }
  0x29   : > { %s556_s18 = sshll.u32 %s4767_s14, 4  ;;  %s585_s0 = sshll.u32 %s4769_s16, 4  ;;  %s557_s18 = int_to_ptr.hbm [resolvable:$true] %s556_s18  ;;  %s586_s0 = int_to_ptr.hbm [resolvable:$true] %s585_s0 }
  0x2a   : > { %3543 = dma.hbm_to_vmem [thread:$0]  (!%p4140_p5), %s531_s23, 96, %s533_s27, [#allocation11]  }
  0x2b   : > { %s4020_s22 = smov [#allocation15]   ;;  %s4021_s26 = smov [#allocation18]  }
  0x2c   : > { %s558_s24 = sshll.u32 %s4020_s22, 4  ;;  %s587_s10 = sshll.u32 %s4021_s26, 4  ;;  %s559_s24 = int_to_ptr.vmem [resolvable:$true] %s558_s24  ;;  %s588_s10 = int_to_ptr.vmem [resolvable:$true] %s587_s10 }
  0x2d   : > { %3549 = dma.hbm_to_vmem [thread:$0]  (!%p4140_p5), %s557_s18, 2048, %s559_s24, [#allocation14], %s4787_s21, %s4787_s21, %s4786_s19  }
  0x2e   : > { %3555 = dma.hbm_to_vmem [thread:$0]  (!%p4140_p5), %s586_s0, 32, %s588_s10, [#allocation17]  }
  0x2f   : > { %616 = sbr.rel (%p4129_p3) target bundleno = 2326 (0x916), region = 88 }
  0x34   : > { %3980 = dma.done.wait (%p3556_p2), [#allocation3], 32  }
  0x35   : > { %3982 = vsyncadd (%p3556_p2), [#allocation3], 4294967264 }
  0x36   : > { %3984 = dma.done.wait (%p3556_p2), [#allocation5], 576  }
  0x37   : > { %3986 = vsyncadd (%p3556_p2), [#allocation5], 4294966720 }
  0x38   : > { %3988 = dma.done.wait (%p3556_p2), [#allocation8], 1088  }
  0x39   : > { %3990 = vsyncadd (%p3556_p2), [#allocation8], 4294966208 }
  0x3a   : > { %3992 = dma.done.wait (%p3556_p2), [#allocation11], 7776  }
  0x3b   : > { %3994 = vsyncadd (%p3556_p2), [#allocation11], 4294959520 }
  0x3c   : > { %3996 = dma.done.wait (%p3556_p2), [#allocation14], 2080  }
  0x3d   : > { %3998 = vsyncadd (%p3556_p2), [#allocation14], 4294965216 }
  0x3e   : > { %4000 = dma.done.wait (%p3556_p2), [#allocation17], 1056  }
  0x3f   : > { %4002 = vsyncadd (%p3556_p2), [#allocation17], 4294966240  ;;  %p723_p6 = scmp.lt.s32.totalorder %s4124_s28, 1  ;;  %vm773_vm0 = vcmask 1044480   ;;  %vm774_vm1 = vcmask 1045504   ;;  %v4022_v0 = vmov 65535  }
  0x40   : > { %v775_v1 = vsel %vm773_vm0, 4294967295, %v4022_v0  ;;  %v3330_v2 = vld [vmem:[%s4755_s2 + $0x14] sm:$0xf]  ;;  %v2721_v3 = vld [vmem:[%s4755_s2 + $0x18] sm:$0x30]  ;;  %s4788_s30 = sld [smem:[#allocation26_spill]] }
  0x41   : > { %s4791_s28 = smov (!%p723_p6, %s4124_s28), 1  ;;  %v4242_v4 = vsel %vm774_vm1, %v775_v1, 0  ;;  %v2724_v5 = vor.u32 %v3330_v2, %v2721_v3  ;;  %v3328_v6 = vld [vmem:[%s4755_s2 + $0x4] sm:$0xf]  ;;  %v2713_v7 = vld [vmem:[%s4755_s2 + $0x8] sm:$0xf0] }
  0x42   : > { %s3327_s29 = sshll.u32 %s4791_s28, 4  ;;  %v2719_v8 = vld [vmem:[%s4755_s2 + $0x10] sm:$0xf]  ;;  %v3331_v9 = vld [vmem:[%s4755_s2 + $0x14] sm:$0x30]  ;;  %v2716_v14 = vor.u32 %v3328_v6, %v2713_v7  ;;  %vm769_vm2 = vcmask 220160  }
  0x43   : > { %v781_v10 = vand.u32 %v2724_v5, %v4242_v4  ;;  %v2720_v11 = vor.u32 %v3331_v9, %v2719_v8  ;;  %v2711_v12 = vld [vmem:[%s4755_s2] sm:$0xf]  ;;  %v3329_v13 = vld [vmem:[%s4755_s2 + $0x4] sm:$0xf0]  ;;  %v4024_v27 = vmov 16.0   ;;  %vm821_vm3 = vcmask 1048064  }
  0x44   : > { %v2712_v18 = vor.u32 %v3329_v13, %v2711_v12  ;;  %v745_v20 = vld [vmem:[#allocation2] sm:$0x3]  ;;  %3611 = vrcp.f32 %v4024_v27  ;;  %v3334_v53 = vld [vmem:[#allocation4 + $0x10] sm:$0xff]  ;;  %v3333_v55 = vld [vmem:[#allocation4 + $0x8] sm:$0xff]  ;;  %vm899_vm9 = vcmask 523264   ;;  %vm1101_vm0 = vcmask 744448  }
  0x45   : > { %803 = vmatpush.bf16.msra.mxu1 %v781_v10  ;;  %v778_v17 = vand.u32 %v2720_v11, %v4242_v4  ;;  %v748_v21 = vperm.slane %v745_v20, 1  ;;  %v747_v28 = vperm.slane %v745_v20, 0  ;;  %v3335_v51 = vld [vmem:[#allocation4 + $0x18] sm:$0xff]  ;;  %v3332_v5 = vld [vmem:[#allocation4] sm:$0xff]  ;;  %s2708_s23 = sshll.u32 %s4791_s28, 3 }
  0x46   : > { %s727_s0 = scalar_lea.vmem %s4788_s30, %s3327_s29  ;;  %s4023_s29 = smov 64   ;;  %907 = vmatpush.bf16.msra.mxu2 %v3335_v51  ;;  %v3609_v10 = vld [vmem:[#allocation6] ss:$0 sm:$0xff]  ;;  %v3351_v27 = vld [vmem:[%s4759_s6 + $0x7c] sm:$0xf] }
  0x47   : > { %v4266_v15 = vld [vmem:[%s727_s0] sm:$0xff]  ;;  %v4268_v16 = vld [vmem:[%s727_s0 + $0x8] sm:$0xff]  ;;  %789 = vmatpush.bf16.msra.mxu0 %v778_v17  ;;  %v3347_v51 = vld [vmem:[%s4759_s6 + $0x58] sm:$0xf0]  ;;  %s736_s27 = scalar_lea.vmem %s4770_s17, %s2708_s23 }
  0x48   : > { %v4273_v19 = vpack.c.bf16 %v4268_v16, %v4266_v15 }
  0x49   : > { %804 = vmatpush.bf16.msra.mxu1 %v2716_v14 }
  0x4a   : > { %v3612_v31 = vpop.eup %3611  ;;  %908 = vmatpush.bf16.msra.mxu2 %v3334_v53 }
  0x4b   : > { %790 = vmatpush.bf16.msra.mxu0 %v2712_v18  ;;  %v832_v35 = vmul.f32 16.0, %v3612_v31  ;;  %vm836_vm4 = vweird.f32 %v3612_v31 }
  0x4c   : > { %2726 = vmatmul.msk.bf16.vlgmr.msra.gmra.mxu1 %vm769_vm2, %v4273_v19 }
  0x4d   : > { %v833_v39 = vsub.f32 1.0, %v832_v35  ;;  %v2795_v35 = vld [vmem:[%s4759_s6 + $0x60] sm:$0xf] }
  0x4e   : > { %2725 = vmatmul.msk.bf16.vlgmr.msra.gmra.mxu0 %vm769_vm2, %v4273_v19  ;;  %909 = vmatpush.bf16.msra.mxu2 %v3333_v55  ;;  %v3343_v55 = vld [vmem:[%s4759_s6 + $0x38] sm:$0xf0] }
  0x4f   : > { %v834_v43 = vmul.f32 %v3612_v31, %v833_v39  ;;  %v2797_v39 = vld [vmem:[%s4759_s6 + $0x6c] sm:$0xf0] }
  0x51   : > { %v835_v46 = vadd.f32 %v3612_v31, %v834_v43 }
  0x52   : > { %910 = vmatpush.bf16.msra.mxu2 %v3332_v5 }
  0x53   : > { %v4281_v49 = vsel %vm836_vm4, %v3612_v31, %v835_v46  ;;  %v3345_v46 = vld [vmem:[%s4759_s6 + $0x4c] sm:$0xf] }
  0xc9   : > { %v806_v22 = vpop.f32.mrf.mxu1 }
  0xca   : > { %v807_v23 = vadd.f32 %v806_v22, %v748_v21 }
  0xcb   : > { %v792_v26 = vpop.f32.mrf.mxu0 }
  0xcc   : > { %813 = vrot.lane.b32.xlu0 %v807_v23, %s4023_s29  ;;  %v793_v30 = vadd.f32 %v792_v26, %v747_v28  ;;  %v3352_v26 = vld [vmem:[%s4759_s6 + $0x80] sm:$0x30] }
  0xd1   : > { %v808_v24 = vpop.f32.mrf.mxu1 }
  0xd2   : > { %v809_v25 = vadd.f32 %v808_v24, %v748_v21  ;;  %v3604_v24 = vpack.i.bf16 %v4268_v16, %v4266_v15  ;;  %v2815_v15 = vld [vmem:[%s4759_s6 + $0x80] sm:$0xf]  ;;  %v3353_v16 = vld [vmem:[%s4759_s6 + $0x88] sm:$0x30] }
  0xd3   : > { %v794_v32 = vpop.f32.mrf.mxu0  ;;  %v2816_v31 = vor.u32 %v3353_v16, %v2815_v15 }
  0xd4   : > { %815 = vrot.lane.b32.xlu0 %v809_v25, %s4023_s29  ;;  %v795_v33 = vadd.f32 %v794_v32, %v747_v28  ;;  %v2807_v25 = vld [vmem:[%s4759_s6 + $0x78] sm:$0xf] }
  0xd5   : > { %v2808_v28 = vor.u32 %v3352_v26, %v2807_v25  ;;  %v2755_v25 = vld [vmem:[%s4759_s6 + $0x8] sm:$0xf]  ;;  %v3338_v26 = vld [vmem:[%s4759_s6 + $0x10] sm:$0xf0] }
  0xd7   : > { %v1106_v32 = vand.u32 %v2808_v28, %v4242_v4  ;;  %v2756_v28 = vor.u32 %v3338_v26, %v2755_v25  ;;  %v3354_v26 = vld [vmem:[#allocation7] sm:$0xff] }
  0xd9   : > { %1116 = vmatpush.bf16.msra.mxu3 %v1106_v32 }
 0x13e   : > { %v814_v29 = vpop.permute.xlu0 %813 }
 0x13f   : > { %v819_v34 = vmul.f32 %v814_v29, %v793_v30  ;;  %v2809_v29 = vld [vmem:[%s4759_s6 + $0x84] sm:$0x30] }
 0x141   : > { %v822_v38 = vsel %vm821_vm3, %v819_v34, 0.0  ;;  %v1112_v34 = vand.u32 %v2816_v31, %v4242_v4 }
 0x143   : > { %1144 = vmatpush.bf16.msrb.mxu1 %v1112_v34 }
 0x146   : > { %v816_v36 = vpop.permute.xlu0 %815 }
 0x147   : > { %v820_v37 = vmul.f32 %v816_v36, %v795_v33  ;;  %v3349_v36 = vld [vmem:[%s4759_s6 + $0x68] sm:$0xf0] }
 0x149   : > { %v823_v40 = vsel %vm821_vm3, %v820_v37, 0.0  ;;  %v3348_v37 = vld [vmem:[%s4759_s6 + $0x64] sm:$0xf] }
 0x14a   : > { %v824_v41 = vadd.f32 %v823_v40, %v822_v38  ;;  %v2796_v38 = vor.u32 %v3349_v36, %v2795_v35  ;;  %v2803_v40 = vld [vmem:[%s4759_s6 + $0x68] sm:$0xf] }
 0x14c   : > { %v825_v42 = vrot.slane %v824_v41, 4  ;;  %1117 = vmatpush.bf16.msra.mxu3 %v2796_v38 }
 0x14e   : > { %v826_v44 = vadd.f32 %v825_v42, %v824_v41  ;;  %v3350_v41 = vld [vmem:[%s4759_s6 + $0x70] sm:$0xf0]  ;;  %v2800_v42 = vor.u32 %v3348_v37, %v2797_v39 }
 0x14f   : > { %v2804_v43 = vor.u32 %v3350_v41, %v2803_v40 }
 0x150   : > { %v827_v45 = vrot.slane %v826_v44, 2 }
 0x151   : > { %1145 = vmatpush.bf16.msrb.mxu1 %v2804_v43 }
 0x152   : > { %v828_v47 = vadd.f32 %v827_v45, %v826_v44  ;;  %v2783_v44 = vld [vmem:[%s4759_s6 + $0x48] sm:$0xf]  ;;  %v3346_v45 = vld [vmem:[%s4759_s6 + $0x50] sm:$0xf0] }
 0x154   : > { %v829_v48 = vrot.slane %v828_v47, 1 }
 0x156   : > { %v830_v50 = vadd.f32 %v829_v48, %v828_v47  ;;  %v2784_v47 = vor.u32 %v3346_v45, %v2783_v44  ;;  %v2785_v48 = vld [vmem:[%s4759_s6 + $0x54] sm:$0xf0] }
 0x158   : > { %v838_v52 = vmul.f32 %v4281_v49, %v830_v50  ;;  %v2791_v50 = vld [vmem:[%s4759_s6 + $0x50] sm:$0xf]  ;;  %1118 = vmatpush.bf16.msra.mxu3 %v2784_v47 }
 0x159   : > { %v2792_v53 = vor.u32 %v3347_v51, %v2791_v50 }
 0x15a   : > { %v2727_v54 = vmul.f32 -1.442695, %v838_v52  ;;  %v2788_v52 = vor.u32 %v3345_v46, %v2785_v48 }
 0x15b   : > { %1146 = vmatpush.bf16.msrb.mxu1 %v2792_v53 }
 0x15c   : > { %3613 = vpow2.f32 %v2727_v54  ;;  %v2771_v54 = vld [vmem:[%s4759_s6 + $0x30] sm:$0xf] }
 0x162   : > { %v3614_v56 = vpop.eup %3613 }
 0x163   : > { %v842_v57 = vadd.f32 1.0, %v3614_v56  ;;  %v3342_v56 = vld [vmem:[%s4759_s6 + $0x34] sm:$0xf] }
 0x165   : > { %3615 = vrcp.f32 %v842_v57  ;;  %v854_v61 = vand.u32 2147483648, %v842_v57  ;;  %v852_v63 = vand.u32 2147483647, %v842_v57  ;;  %vm848_vm6 = vweird.f32 %v842_v57 }
 0x167   : > { %v855_v1 = vor.u32 1.1754944e-38, %v854_v61  ;;  %vm853_vm8 = vcmp.eq.f32.partialorder %v852_v63, 8.507059e+37 }
 0x16b   : > { %v3616_v58 = vpop.eup %3615 }
 0x16c   : > { %v844_v59 = vmul.f32 %v3616_v58, %v842_v57  ;;  %vm849_vm5 = vweird.f32 %v3616_v58  ;;  %v2772_v57 = vor.u32 %v3343_v55, %v2771_v54 }
 0x16d   : > { %vm850_vm7 = vmor %vm848_vm6, %vm849_vm5 }
 0x16e   : > { %v845_v60 = vsub.f32 1.0, %v844_v59  ;;  %v2779_v59 = vld [vmem:[%s4759_s6 + $0x38] sm:$0xf]  ;;  %1119 = vmatpush.bf16.msra.mxu3 %v2772_v57 }
 0x170   : > { %v846_v62 = vmul.f32 %v3616_v58, %v845_v60  ;;  %v3344_v60 = vld [vmem:[%s4759_s6 + $0x40] sm:$0xf0] }
 0x172   : > { %v847_v0 = vadd.f32 %v3616_v58, %v846_v62  ;;  %v2780_v62 = vor.u32 %v3344_v60, %v2779_v59 }
 0x174   : > { %v851_v2 = vsel %vm850_vm7, %v3616_v58, %v847_v0  ;;  %v2773_v58 = vld [vmem:[%s4759_s6 + $0x3c] sm:$0xf0]  ;;  %1147 = vmatpush.bf16.msrb.mxu1 %v2780_v62  ;;  %v2759_v0 = vld [vmem:[%s4759_s6 + $0x18] sm:$0xf] }
 0x175   : > { %v856_v3 = vsel %vm853_vm8, %v855_v1, %v851_v2  ;;  %v2776_v61 = vor.u32 %v3342_v56, %v2773_v58  ;;  %v3340_v1 = vld [vmem:[%s4759_s6 + $0x20] sm:$0xf0]  ;;  %v3339_v2 = vld [vmem:[%s4759_s6 + $0x1c] sm:$0xf] }
 0x176   : > { %859 = vrot.lane.b32.xlu1 %v856_v3, %s4023_s29  ;;  %v2760_v5 = vor.u32 %v3340_v1, %v2759_v0  ;;  %v3360_v62 = vld [vmem:[#allocation7 + $0x30] sm:$0xff]  ;;  %v3359_v1 = vld [vmem:[#allocation7 + $0x28] sm:$0xff] }
 0x178   : > { %1120 = vmatpush.bf16.msra.mxu3 %v2760_v5 }
 0x1e8   : > { %v860_v6 = vpop.permute.xlu1 %859 }
 0x1e9   : > { %v862_v7 = vmul.f32 %v860_v6, %v793_v30  ;;  %v863_v8 = vmul.f32 %v860_v6, %v795_v33  ;;  %v2812_v30 = vor.u32 %v3351_v27, %v2809_v29  ;;  %v2761_v6 = vld [vmem:[%s4759_s6 + $0x24] sm:$0xf0] }
 0x1eb   : > { %v864_v9 = vpack.c.bf16 %v863_v8, %v862_v7  ;;  %v1109_v33 = vand.u32 %v2812_v30, %v4242_v4  ;;  %v2767_v7 = vld [vmem:[%s4759_s6 + $0x20] sm:$0xf] }
 0x1ed   : > { %2744 = vmatmul.msk.bf16.vlgmr.msra.gmra.mxu2 %vm899_vm9, %v864_v9  ;;  %1130 = vmatpush.bf16.msrb.mxu0 %v1109_v33  ;;  %v2764_v9 = vor.u32 %v3339_v2, %v2761_v6 }
 0x1f1   : > { %1131 = vmatpush.bf16.msrb.mxu0 %v2800_v42 }
 0x1f5   : > { %1132 = vmatpush.bf16.msrb.mxu0 %v2788_v52 }
 0x1f9   : > { %1133 = vmatpush.bf16.msrb.mxu0 %v2776_v61 }
 0x1fd   : > { %1134 = vmatpush.bf16.msrb.mxu0 %v2764_v9 }
 0x270   : > { %v912_v11 = vpop.f32.mrf.mxu2 }
 0x271   : > { %v4286_v12 = vadd.f32 %v3609_v10, %v912_v11 }
 0x273   : > { %v917_v13 = vsel %vm899_vm9, %v4286_v12, 0.0  ;;  %v925_v14 = vmul.f32 %v4286_v12, %v4286_v12 }
 0x274   : > { %918 = vadd.xlane.f32.xlu1 %v917_v13 }
 0x275   : > { %v927_v17 = vsel %vm899_vm9, %v925_v14, 0.0 }
 0x276   : > { %928 = vadd.xlane.f32.xlu2 %v927_v17  ;;  %v2747_v17 = vld [vmem:[%s4759_s6] sm:$0xf] }
 0x278   : > { %v914_v18 = vpop.f32.mrf.mxu2 }
 0x279   : > { %v4293_v20 = vadd.f32 %v3609_v10, %v914_v18  ;;  %v3341_v10 = vld [vmem:[%s4759_s6 + $0x28] sm:$0xf0] }
 0x27a   : > { %v2768_v14 = vor.u32 %v3341_v10, %v2767_v7  ;;  %v3337_v18 = vld [vmem:[%s4759_s6 + $0x8] sm:$0xf0] }
 0x27b   : > { %v926_v21 = vmul.f32 %v4293_v20, %v4293_v20  ;;  %v920_v23 = vsel %vm899_vm9, %v4293_v20, 0.0 }
 0x27c   : > { %1148 = vmatpush.bf16.msrb.mxu1 %v2768_v14 }
 0x27d   : > { %v930_v22 = vsel %vm899_vm9, %v926_v21, 0.0  ;;  %v3336_v21 = vld [vmem:[%s4759_s6 + $0x4] sm:$0xf] }
 0x27e   : > { %931 = vadd.xlane.f32.xlu0 %v930_v22  ;;  %921 = vadd.xlane.f32.xlu2 %v920_v23  ;;  %v2748_v23 = vor.u32 %v3337_v18, %v2747_v17  ;;  %v3356_v18 = vld [vmem:[#allocation7 + $0x10] sm:$0xff] }
 0x280   : > { %1121 = vmatpush.bf16.msra.mxu3 %v2748_v23  ;;  %1149 = vmatpush.bf16.msrb.mxu1 %v2756_v28  ;;  %v3355_v23 = vld [vmem:[#allocation7 + $0x8] sm:$0xff] }
 0x296   : > { %3605 = vrot.lane.b32.xlu2 %v3604_v24, %s4023_s29  ;;  %v2749_v24 = vld [vmem:[%s4759_s6 + $0xc] sm:$0xf0] }
 0x297   : > { %v2752_v27 = vor.u32 %v3336_v21, %v2749_v24 }
 0x299   : > { %1135 = vmatpush.bf16.msrb.mxu0 %v2752_v27 }
 0x2e7   : > { %v919_v63 = vpop.xlane.xlu1 %918 }
 0x2e8   : > { %v923_v3 = vmul.f32 0.015625, %v919_v63 }
 0x2e9   : > { %v929_v8 = vpop.xlane.xlu2 %928 }
 0x2ea   : > { %v937_v11 = vmul.f32 %v923_v3, %v923_v3  ;;  %v933_v13 = vmul.f32 0.015625, %v929_v8  ;;  %v935_v48 = vsub.f32 %v4286_v12, %v923_v3  ;;  %v3361_v12 = vld [vmem:[#allocation7 + $0x38] sm:$0xff]  ;;  %v3358_v8 = vld [vmem:[#allocation7 + $0x20] sm:$0xff] }
 0x2eb   : > { %1254 = vmatpush.bf16.msrb.mxu2 %v3361_v12 }
 0x2ec   : > { %v939_v22 = vsub.f32 %v933_v13, %v937_v11  ;;  %v3357_v13 = vld [vmem:[#allocation7 + $0x18] sm:$0xff] }
 0x2ee   : > { %v941_v29 = vadd.f32 1e-05, %v939_v22 }
 0x2ef   : > { %1255 = vmatpush.bf16.msrb.mxu2 %v3360_v62  ;;  %v3408_v62 = vld [vmem:[#allocation10 + $0x16c] sm:$0xf0] }
 0x2f0   : > { %3617 = vrsqrt.f32 %v941_v29  ;;  %vm949_vm11 = vweird.f32 %v941_v29 }
 0x2f1   : > { %v932_v15 = vpop.xlane.xlu0 %931  ;;  %v922_v16 = vpop.xlane.xlu2 %921 }
 0x2f2   : > { %v924_v30 = vmul.f32 0.015625, %v922_v16  ;;  %v934_v31 = vmul.f32 0.015625, %v932_v15 }
 0x2f3   : > { %1256 = vmatpush.bf16.msrb.mxu2 %v3359_v1  ;;  %v3402_v1 = vld [vmem:[#allocation10 + $0x13c] sm:$0xf0] }
 0x2f4   : > { %v938_v32 = vmul.f32 %v924_v30, %v924_v30  ;;  %v936_v51 = vsub.f32 %v4293_v20, %v924_v30  ;;  %v1000_v20 = vld [vmem:[%s4760_s7] sm:$0x7] }
 0x2f5   : > { %v1003_v63 = vperm.slane %v1000_v20, 1  ;;  %v1004_v0 = vperm.slane %v1000_v20, 2 }
 0x2f6   : > { %v3618_v33 = vpop.eup %3617  ;;  %v940_v34 = vsub.f32 %v934_v31, %v938_v32 }
 0x2f7   : > { %v944_v35 = vmul.f32 %v3618_v33, %v941_v29  ;;  %vm950_vm10 = vweird.f32 %v3618_v33  ;;  %1257 = vmatpush.bf16.msrb.mxu2 %v3358_v8  ;;  %v3396_v8 = vld [vmem:[#allocation10 + $0x10c] sm:$0xf0] }
 0x2f8   : > { %v942_v36 = vadd.f32 1e-05, %v940_v34  ;;  %vm951_vm12 = vmor %vm949_vm11, %vm950_vm10 }
 0x2f9   : > { %v945_v37 = vmul.f32 %v3618_v33, %v944_v35  ;;  %v3606_v46 = vpop.permute.xlu2 %3605  ;;  %v1002_v35 = vperm.slane %v1000_v20, 0 }
 0x2fa   : > { %3619 = vrsqrt.f32 %v942_v36  ;;  %vm959_vm14 = vweird.f32 %v942_v36  ;;  %v3608_v52 = vunpack.i.h.bf16 %v3606_v46  ;;  %v3607_v53 = vunpack.i.l.bf16 %v3606_v46 }
 0x2fb   : > { %v946_v38 = vmul.f32 0.5, %v945_v37  ;;  %1258 = vmatpush.bf16.msrb.mxu2 %v3357_v13  ;;  %v3407_v13 = vld [vmem:[#allocation10 + $0x164] sm:$0xf0] }
 0x2fd   : > { %v947_v39 = vsub.f32 1.5, %v946_v38 }
 0x2ff   : > { %v948_v42 = vmul.f32 %v3618_v33, %v947_v39  ;;  %1259 = vmatpush.bf16.msrb.mxu2 %v3356_v18  ;;  %v3049_v18 = vld [vmem:[#allocation10 + $0x198] sm:$0xf0] }
 0x300   : > { %v3620_v40 = vpop.eup %3619 }
 0x301   : > { %v954_v41 = vmul.f32 %v3620_v40, %v942_v36  ;;  %vm960_vm13 = vweird.f32 %v3620_v40  ;;  %v952_v47 = vsel %vm951_vm12, %v3618_v33, %v948_v42 }
 0x302   : > { %vm961_vm15 = vmor %vm959_vm14, %vm960_vm13  ;;  %v963_v54 = vmul.f32 %v952_v47, %v935_v48  ;;  %v3071_v48 = vld [vmem:[#allocation10 + $0x1b0] sm:$0xf] }
 0x303   : > { %v955_v43 = vmul.f32 %v3620_v40, %v954_v41  ;;  %1260 = vmatpush.bf16.msrb.mxu2 %v3355_v23  ;;  %v3390_v23 = vld [vmem:[#allocation10 + $0xdc] sm:$0xf0] }
 0x304   : > { %v973_v57 = vsel %vm899_vm9, %v963_v54, %v3607_v53  ;;  %v3413_v53 = vld [vmem:[#allocation10 + $0x194] sm:$0xf0] }
 0x305   : > { %v956_v44 = vmul.f32 0.5, %v955_v43 }
 0x307   : > { %v957_v45 = vsub.f32 1.5, %v956_v44  ;;  %1261 = vmatpush.bf16.msrb.mxu2 %v3354_v26 }
 0x309   : > { %v958_v50 = vmul.f32 %v3620_v40, %v957_v45 }
 0x30b   : > { %v962_v55 = vsel %vm961_vm15, %v3620_v40, %v958_v50  ;;  %v3419_v50 = vld [vmem:[#allocation10 + $0x1c4] sm:$0x30] }
 0x30c   : > { %v964_v56 = vmul.f32 %v962_v55, %v936_v51  ;;  %v3072_v51 = vor.u32 %v3419_v50, %v3071_v48  ;;  %v2977_v48 = vld [vmem:[#allocation10 + $0x108] sm:$0xf0]  ;;  %v3393_v50 = vld [vmem:[#allocation10 + $0xfc] sm:$0xf] }
 0x30e   : > { %v974_v58 = vsel %vm899_vm9, %v964_v56, %v3608_v52  ;;  %v3047_v52 = vld [vmem:[#allocation10 + $0x180] sm:$0xf]  ;;  %v1682_v54 = vand.u32 %v3072_v51, %v4242_v4  ;;  %v3610_v56 = vld [vmem:[#allocation9] ss:$0 sm:$0xff] }
 0x30f   : > { %v975_v59 = vpack.c.bf16 %v974_v58, %v973_v57  ;;  %v3048_v55 = vor.u32 %v3413_v53, %v3047_v52  ;;  %v2985_v52 = vld [vmem:[#allocation10 + $0x110] sm:$0xf0] }
 0x310   : > { %1719 = vmatpush.bf16.msra.mxu2 %v1682_v54  ;;  %v2988_v53 = vor.u32 %v3393_v50, %v2985_v52  ;;  %v2951_v54 = vld [vmem:[#allocation10 + $0xc0] sm:$0xf]  ;;  %v2993_v50 = vld [vmem:[#allocation10 + $0x118] sm:$0xf0]  ;;  %v3365_v52 = vld [vmem:[#allocation10 + $0x14] sm:$0xf0] }
 0x311   : > { %2817 = vmatmul.msk.bf16.vlgmr.msra.gmra.mxu3 %vm1101_vm0, %v975_v59  ;;  %2818 = vmatmul.msk.bf16.vlgmr.msrb.gmra.mxu0 %vm1101_vm0, %v975_v59 }
 0x312   : > { %2819 = vmatmul.msk.bf16.vlgmr.msrb.gmra.mxu1 %vm1101_vm0, %v975_v59 }
 0x314   : > { %1720 = vmatpush.bf16.msra.mxu2 %v3048_v55  ;;  %v3389_v55 = vld [vmem:[#allocation10 + $0xd4] sm:$0xf0] }
 0x38e   : > { %v1137_v60 = vpop.f32.mrf.mxu0 }
 0x38f   : > { %v1151_v61 = vpop.f32.mrf.mxu1  ;;  %v1138_v2 = vadd.f32 %v1137_v60, %v1003_v63 }
 0x390   : > { %v1152_v3 = vadd.f32 %v1151_v61, %v1004_v0  ;;  %v3031_v61 = vld [vmem:[#allocation10 + $0x158] sm:$0xf] }
 0x392   : > { %v1156_v10 = vmul.f32 %v1152_v3, %v1138_v2  ;;  %v3416_v3 = vld [vmem:[#allocation10 + $0x1b4] sm:$0xf] }
 0x394   : > { %v1123_v30 = vpop.f32.mrf.mxu3 }
 0x395   : > { %v1124_v41 = vadd.f32 %v1123_v30, %v1002_v35  ;;  %v3401_v30 = vld [vmem:[#allocation10 + $0x134] sm:$0xf0] }
 0x396   : > { %v1139_v5 = vpop.f32.mrf.mxu0 }
 0x397   : > { %v1140_v6 = vadd.f32 %v1139_v5, %v1003_v63  ;;  %v1153_v7 = vpop.f32.mrf.mxu1  ;;  %v3032_v63 = vor.u32 %v3408_v62, %v3031_v61  ;;  %v3073_v5 = vld [vmem:[#allocation10 + $0x1c8] sm:$0x30]  ;;  %v2953_v61 = vld [vmem:[#allocation10 + $0xd8] sm:$0xf0] }
 0x398   : > { %v1154_v9 = vadd.f32 %v1153_v7, %v1004_v0  ;;  %v3007_v0 = vld [vmem:[#allocation10 + $0x128] sm:$0xf]  ;;  %v2983_v7 = vld [vmem:[#allocation10 + $0xf8] sm:$0xf]  ;;  %v3387_v62 = vld [vmem:[#allocation10 + $0xcc] sm:$0xf] }
 0x399   : > { %v3008_v2 = vor.u32 %v3402_v1, %v3007_v0  ;;  %v2961_v0 = vld [vmem:[#allocation10 + $0xe0] sm:$0xf0] }
 0x39a   : > { %v1157_v11 = vmul.f32 %v1154_v9, %v1140_v6  ;;  %v3076_v6 = vor.u32 %v3416_v3, %v3073_v5  ;;  %v2964_v1 = vor.u32 %v3387_v62, %v2961_v0  ;;  %v3383_v3 = vld [vmem:[#allocation10 + $0xa4] sm:$0xf0]  ;;  %v2865_v0 = vld [vmem:[#allocation10 + $0x20] sm:$0xf0] }
 0x39c   : > { %v1158_v14 = vadd.f32 %v1157_v11, %v1156_v10  ;;  %v1125_v38 = vpop.f32.mrf.mxu3  ;;  %v1685_v9 = vand.u32 %v3076_v6, %v4242_v4  ;;  %v2984_v10 = vor.u32 %v3396_v8, %v2983_v7  ;;  %v3023_v11 = vld [vmem:[#allocation10 + $0x150] sm:$0xf]  ;;  %v2863_v6 = vld [vmem:[#allocation10 + $0x8] sm:$0xf]  ;;  %v3366_v7 = vld [vmem:[#allocation10 + $0x1c] sm:$0xf0] }
 0x39d   : > { %v1126_v42 = vadd.f32 %v1125_v38, %v1002_v35  ;;  %v3398_v35 = vld [vmem:[#allocation10 + $0x124] sm:$0xf]  ;;  %v2864_v8 = vor.u32 %v3366_v7, %v2863_v6  ;;  %v3055_v7 = vld [vmem:[#allocation10 + $0x188] sm:$0xf] }
 0x39e   : > { %v1159_v17 = vrot.slane %v1158_v14, 4  ;;  %1747 = vmatpush.bf16.msra.mxu0 %v1685_v9  ;;  %v3380_v9 = vld [vmem:[#allocation10 + $0x94] sm:$0xf] }
 0x3a0   : > { %v1160_v21 = vadd.f32 %v1159_v17, %v1158_v14  ;;  %v3024_v14 = vor.u32 %v3407_v13, %v3023_v11  ;;  %v3410_v17 = vld [vmem:[#allocation10 + $0x184] sm:$0xf]  ;;  %v3381_v11 = vld [vmem:[#allocation10 + $0x9c] sm:$0xf] }
 0x3a2   : > { %v1161_v22 = vrot.slane %v1160_v21, 2  ;;  %1699 = vmatpush.bf16.msrb.mxu3 %v3024_v14  ;;  %v2937_v14 = vld [vmem:[#allocation10 + $0xb0] sm:$0xf0] }
 0x3a4   : > { %v1162_v24 = vadd.f32 %v1161_v22, %v1160_v21  ;;  %v2959_v21 = vld [vmem:[#allocation10 + $0xc8] sm:$0xf]  ;;  %v3052_v22 = vor.u32 %v3410_v17, %v3049_v18  ;;  %v3406_v17 = vld [vmem:[#allocation10 + $0x164] sm:$0xf]  ;;  %v3041_v18 = vld [vmem:[#allocation10 + $0x178] sm:$0xf0] }
 0x3a5   : > { %v2960_v26 = vor.u32 %v3390_v23, %v2959_v21  ;;  %v2940_v21 = vor.u32 %v3381_v11, %v2937_v14  ;;  %v2903_v23 = vld [vmem:[#allocation10 + $0x60] sm:$0xf] }
 0x3a6   : > { %v1163_v25 = vrot.slane %v1162_v24, 1  ;;  %1748 = vmatpush.bf16.msra.mxu0 %v3052_v22  ;;  %v3044_v22 = vor.u32 %v3406_v17, %v3041_v18 }
 0x3a8   : > { %v1164_v27 = vadd.f32 %v1163_v25, %v1162_v24  ;;  %v3404_v24 = vld [vmem:[#allocation10 + $0x154] sm:$0xf]  ;;  %v3025_v25 = vld [vmem:[#allocation10 + $0x168] sm:$0xf0] }
 0x3a9   : > { %3094 = vmatmul.msk.bf16.vlgmr.msra.gmra.mxu0 %vm769_vm2, %v4273_v19 }
 0x3aa   : > { %v1165_v28 = vmul.f32 %v1164_v27, %v4281_v49  ;;  %v3028_v27 = vor.u32 %v3404_v24, %v3025_v25  ;;  %v3377_v24 = vld [vmem:[#allocation10 + $0x74] sm:$0xf0] }
 0x3ab   : > { %v2904_v25 = vor.u32 %v3377_v24, %v2903_v23 }
 0x3ac   : > { %v2820_v29 = vmul.f32 -1.442695, %v1165_v28  ;;  %v3405_v28 = vld [vmem:[#allocation10 + $0x15c] sm:$0xf]  ;;  %1727 = vmatpush.bf16.msra.mxu1 %v3028_v27 }
 0x3ad   : > { %v2905_v27 = vld [vmem:[#allocation10 + $0x78] sm:$0xf0] }
 0x3ae   : > { %3621 = vpow2.f32 %v2820_v29  ;;  %v3033_v29 = vld [vmem:[#allocation10 + $0x170] sm:$0xf0] }
 0x3b4   : > { %v3622_v15 = vpop.eup %3621 }
 0x3b5   : > { %v1169_v16 = vadd.f32 1.0, %v3622_v15  ;;  %v3036_v15 = vor.u32 %v3405_v28, %v3033_v29  ;;  %v3375_v28 = vld [vmem:[#allocation10 + $0x6c] sm:$0xf] }
 0x3b7   : > { %3623 = vrcp.f32 %v1169_v16  ;;  %v1181_v34 = vand.u32 2147483648, %v1169_v16  ;;  %v1179_v37 = vand.u32 2147483647, %v1169_v16  ;;  %vm1175_vm3 = vweird.f32 %v1169_v16  ;;  %1783 = vmatpush.bf16.msrb.mxu0 %v3036_v15 }
 0x3b9   : > { %v1182_v40 = vor.u32 1.1754944e-38, %v1181_v34  ;;  %vm1180_vm5 = vcmp.eq.f32.partialorder %v1179_v37, 8.507059e+37  ;;  %v3399_v37 = vld [vmem:[#allocation10 + $0x12c] sm:$0xf] }
 0x3bd   : > { %v3624_v31 = vpop.eup %3623 }
 0x3be   : > { %v1171_v32 = vmul.f32 %v3624_v31, %v1169_v16  ;;  %vm1176_vm1 = vweird.f32 %v3624_v31  ;;  %v2999_v16 = vld [vmem:[#allocation10 + $0x120] sm:$0xf] }
 0x3bf   : > { %vm1177_vm4 = vmor %vm1175_vm3, %vm1176_vm1 }
 0x3c0   : > { %v1172_v33 = vsub.f32 1.0, %v1171_v32  ;;  %v2935_v32 = vld [vmem:[#allocation10 + $0x98] sm:$0xf] }
 0x3c2   : > { %v1173_v36 = vmul.f32 %v3624_v31, %v1172_v33  ;;  %v3384_v33 = vld [vmem:[#allocation10 + $0xac] sm:$0xf0] }
 0x3c3   : > { %v2936_v34 = vor.u32 %v3384_v33, %v2935_v32 }
 0x3c4   : > { %v1174_v39 = vadd.f32 %v3624_v31, %v1173_v36  ;;  %v3001_v36 = vld [vmem:[#allocation10 + $0x138] sm:$0xf0] }
 0x3c5   : > { %v3004_v38 = vor.u32 %v3398_v35, %v3001_v36  ;;  %v2879_v35 = vld [vmem:[#allocation10 + $0x30] sm:$0xf]  ;;  %v3371_v36 = vld [vmem:[#allocation10 + $0x44] sm:$0xf0] }
 0x3c6   : > { %v1178_v43 = vsel %vm1177_vm4, %v3624_v31, %v1174_v39  ;;  %v3000_v31 = vor.u32 %v3401_v30, %v2999_v16  ;;  %v3009_v39 = vld [vmem:[#allocation10 + $0x140] sm:$0xf0]  ;;  %v3400_v30 = vld [vmem:[#allocation10 + $0x134] sm:$0xf] }
 0x3c7   : > { %v1183_v44 = vsel %vm1180_vm5, %v1182_v40, %v1178_v43  ;;  %v3012_v40 = vor.u32 %v3399_v37, %v3009_v39  ;;  %1728 = vmatpush.bf16.msra.mxu1 %v3004_v38  ;;  %v2913_v16 = vld [vmem:[#allocation10 + $0x80] sm:$0xf0]  ;;  %v2880_v38 = vor.u32 %v3371_v36, %v2879_v35  ;;  %v3411_v36 = vld [vmem:[#allocation10 + $0x18c] sm:$0xf] }
 0x3c8   : > { %v1185_v45 = vmul.f32 %v1183_v44, %v1124_v41  ;;  %v1186_v46 = vmul.f32 %v1183_v44, %v1126_v42  ;;  %1700 = vmatpush.bf16.msrb.mxu3 %v3000_v31  ;;  %v2975_v41 = vld [vmem:[#allocation10 + $0xf0] sm:$0xf]  ;;  %v3395_v42 = vld [vmem:[#allocation10 + $0x104] sm:$0xf0]  ;;  %v3017_v31 = vld [vmem:[#allocation10 + $0x148] sm:$0xf0]  ;;  %v2916_v33 = vor.u32 %v3375_v28, %v2913_v16 }
 0x3c9   : > { %v2976_v43 = vor.u32 %v3395_v42, %v2975_v41  ;;  %v2911_v44 = vld [vmem:[#allocation10 + $0x68] sm:$0xf]  ;;  %1784 = vmatpush.bf16.msrb.mxu0 %v3012_v40  ;;  %v3368_v41 = vld [vmem:[#allocation10 + $0x34] sm:$0xf]  ;;  %v2881_v42 = vld [vmem:[#allocation10 + $0x48] sm:$0xf0] }
 0x3ca   : > { %v1187_v47 = vpack.c.bf16 %v1186_v46, %v1185_v45  ;;  %v3378_v45 = vld [vmem:[#allocation10 + $0x7c] sm:$0xf0]  ;;  %v3081_v28 = vld [vmem:[#allocation10 + $0x1d0] sm:$0x30]  ;;  %v3370_v16 = vld [vmem:[#allocation10 + $0x44] sm:$0xf] }
 0x3cb   : > { %v2912_v46 = vor.u32 %v3378_v45, %v2911_v44  ;;  %v3369_v44 = vld [vmem:[#allocation10 + $0x3c] sm:$0xf]  ;;  %v2889_v45 = vld [vmem:[#allocation10 + $0x50] sm:$0xf0] }
 0x3cc   : > { %1262 = vmatmul.bf16.vlgmr.msrb.gmra.mxu2 %v1187_v47  ;;  %v3392_v47 = vld [vmem:[#allocation10 + $0xf4] sm:$0xf]  ;;  %1701 = vmatpush.bf16.msrb.mxu3 %v2976_v43  ;;  %v2884_v43 = vor.u32 %v3368_v41, %v2881_v42 }
 0x3cd   : > { %1755 = vmatpush.bf16.msrb.mxu2 %v3032_v63  ;;  %v2980_v51 = vor.u32 %v3392_v47, %v2977_v48  ;;  %1785 = vmatpush.bf16.msrb.mxu0 %v2988_v53  ;;  %v2892_v48 = vor.u32 %v3369_v44, %v2889_v45  ;;  %v3089_v44 = vld [vmem:[#allocation10 + $0x1d8] sm:$0x30] }
 0x3cf   : > { %1729 = vmatpush.bf16.msra.mxu1 %v2980_v51  ;;  %v2855_v51 = vld [vmem:[#allocation10] sm:$0xf] }
 0x3d1   : > { %1756 = vmatpush.bf16.msrb.mxu2 %v3008_v2  ;;  %v2927_v2 = vld [vmem:[#allocation10 + $0x90] sm:$0xf]  ;;  %1786 = vmatpush.bf16.msrb.mxu0 %v2964_v1  ;;  %v3388_v1 = vld [vmem:[#allocation10 + $0xd4] sm:$0xf] }
 0x3d2   : > { %v2928_v5 = vor.u32 %v3383_v3, %v2927_v2  ;;  %v2969_v3 = vld [vmem:[#allocation10 + $0xe8] sm:$0xf0] }
 0x3d3   : > { %v2972_v6 = vor.u32 %v3388_v1, %v2969_v3  ;;  %v3039_v3 = vld [vmem:[#allocation10 + $0x160] sm:$0xf] }
 0x3d5   : > { %1757 = vmatpush.bf16.msrb.mxu2 %v2984_v10  ;;  %v2929_v10 = vld [vmem:[#allocation10 + $0xa8] sm:$0xf0]  ;;  %1787 = vmatpush.bf16.msrb.mxu0 %v2940_v21  ;;  %v3376_v21 = vld [vmem:[#allocation10 + $0x74] sm:$0xf] }
 0x3d6   : > { %v2932_v13 = vor.u32 %v3380_v9, %v2929_v10  ;;  %v3382_v10 = vld [vmem:[#allocation10 + $0xa4] sm:$0xf] }
 0x3d9   : > { %1758 = vmatpush.bf16.msrb.mxu2 %v2960_v26  ;;  %v3374_v26 = vld [vmem:[#allocation10 + $0x64] sm:$0xf]  ;;  %1788 = vmatpush.bf16.msrb.mxu0 %v2916_v33 }
 0x3da   : > { %v2908_v15 = vor.u32 %v3374_v26, %v2905_v27  ;;  %v3417_v27 = vld [vmem:[#allocation10 + $0x1bc] sm:$0xf] }
 0x3dc   : > { %3093 = vmatmul.msk.bf16.vlgmr.msra.gmra.mxu2 %vm769_vm2, %v4273_v19 }
 0x3dd   : > { %1759 = vmatpush.bf16.msrb.mxu2 %v2936_v34  ;;  %v3020_v34 = vor.u32 %v3400_v30, %v3017_v31  ;;  %1789 = vmatpush.bf16.msrb.mxu0 %v2892_v48  ;;  %v2897_v30 = vld [vmem:[#allocation10 + $0x58] sm:$0xf0] }
 0x3e1   : > { %1760 = vmatpush.bf16.msrb.mxu2 %v2912_v46  ;;  %v3394_v46 = vld [vmem:[#allocation10 + $0x104] sm:$0xf] }
 0x3e2   : > { %v2996_v53 = vor.u32 %v3394_v46, %v2993_v50 }
 0x44f   : > { %v1263_v57 = vpop.f32.mrf.mxu2 }
 0x450   : > { %v4425_v58 = vadd.f32 %v3610_v56, %v1263_v57  ;;  %v2887_v57 = vld [vmem:[#allocation10 + $0x38] sm:$0xf] }
 0x452   : > { %1268 = vadd.xlane.f32.xlu2 %v4425_v58  ;;  %v1274_v59 = vmul.f32 %v4425_v58, %v4425_v58 }
 0x454   : > { %1276 = vadd.xlane.f32.xlu0 %v1274_v59  ;;  %v3372_v59 = vld [vmem:[#allocation10 + $0x4c] sm:$0xf0] }
 0x457   : > { %v1265_v12 = vpop.f32.mrf.mxu2 }
 0x458   : > { %v4430_v60 = vadd.f32 %v3610_v56, %v1265_v12  ;;  %v2952_v56 = vor.u32 %v3389_v55, %v2951_v54  ;;  %v2888_v12 = vor.u32 %v3372_v59, %v2887_v57  ;;  %v2856_v54 = vor.u32 %v3365_v52, %v2855_v51  ;;  %v3079_v55 = vld [vmem:[#allocation10 + $0x1b8] sm:$0xf]  ;;  %v3412_v52 = vld [vmem:[#allocation10 + $0x194] sm:$0xf] }
 0x45a   : > { %1270 = vadd.xlane.f32.xlu1 %v4430_v60  ;;  %v1275_v20 = vmul.f32 %v4430_v60, %v4430_v60  ;;  %1702 = vmatpush.bf16.msrb.mxu3 %v2952_v56  ;;  %v3420_v56 = vld [vmem:[#allocation10 + $0x1cc] sm:$0x30] }
 0x45b   : > { %1761 = vmatpush.bf16.msrb.mxu2 %v2888_v12  ;;  %v3080_v59 = vor.u32 %v3420_v56, %v3079_v55  ;;  %v3362_v12 = vld [vmem:[#allocation10 + $0x4] sm:$0xf] }
 0x45d   : > { %v1688_v2 = vand.u32 %v3080_v59, %v4242_v4 }
 0x45e   : > { %1703 = vmatpush.bf16.msrb.mxu3 %v2928_v5 }
 0x45f   : > { %1762 = vmatpush.bf16.msrb.mxu2 %v2864_v8  ;;  %v3414_v8 = vld [vmem:[#allocation10 + $0x19c] sm:$0xf0] }
 0x460   : > { %v3056_v9 = vor.u32 %v3414_v8, %v3055_v7 }
 0x462   : > { %1278 = vadd.xlane.f32.xlu1 %v1275_v20  ;;  %v3386_v20 = vld [vmem:[#allocation10 + $0xc4] sm:$0xf]  ;;  %1704 = vmatpush.bf16.msrb.mxu3 %v2904_v25 }
 0x463   : > { %v2956_v63 = vor.u32 %v3386_v20, %v2953_v61  ;;  %1839 = vmatpush.bf16.msra.mxu2 %v3044_v22  ;;  %v2857_v20 = vld [vmem:[#allocation10 + $0x18] sm:$0xf0]  ;;  %v2921_v22 = vld [vmem:[#allocation10 + $0x88] sm:$0xf0] }
 0x464   : > { %v2860_v62 = vor.u32 %v3362_v12, %v2857_v20  ;;  %v2924_v25 = vor.u32 %v3376_v21, %v2921_v22  ;;  %v3087_v12 = vld [vmem:[#allocation10 + $0x1c0] sm:$0xf]  ;;  %v3421_v20 = vld [vmem:[#allocation10 + $0x1d4] sm:$0x30]  ;;  %v2967_v21 = vld [vmem:[#allocation10 + $0xd0] sm:$0xf] }
 0x465   : > { %1730 = vmatpush.bf16.msra.mxu1 %v2956_v63  ;;  %v3363_v63 = vld [vmem:[#allocation10 + $0xc] sm:$0xf]  ;;  %v3088_v1 = vor.u32 %v3421_v20, %v3087_v12  ;;  %v3391_v22 = vld [vmem:[#allocation10 + $0xe4] sm:$0xf0]  ;;  %v3225_v20 = vld [vmem:[%s4765_s12 + $0xf8] sm:$0xf0] }
 0x466   : > { %1705 = vmatpush.bf16.msrb.mxu3 %v2880_v38  ;;  %v2868_v5 = vor.u32 %v3363_v63, %v2865_v0 }
 0x467   : > { %1840 = vmatpush.bf16.msra.mxu2 %v3020_v34  ;;  %v2900_v34 = vor.u32 %v3370_v16, %v2897_v30  ;;  %v2871_v30 = vld [vmem:[#allocation10 + $0x10] sm:$0xf] }
 0x468   : > { %1790 = vmatpush.bf16.msrb.mxu0 %v2868_v5 }
 0x469   : > { %1731 = vmatpush.bf16.msra.mxu1 %v2932_v13  ;;  %v2945_v13 = vld [vmem:[#allocation10 + $0xb8] sm:$0xf0] }
 0x46a   : > { %1706 = vmatpush.bf16.msrb.mxu3 %v2856_v54  ;;  %v2948_v14 = vor.u32 %v3382_v10, %v2945_v13  ;;  %v1694_v10 = vand.u32 %v3088_v1, %v4242_v4  ;;  %v3403_v13 = vld [vmem:[#allocation10 + $0x144] sm:$0xf0]  ;;  %v3215_v1 = vld [vmem:[%s4765_s12 + $0xe0] sm:$0xf] }
 0x46b   : > { %1841 = vmatpush.bf16.msra.mxu2 %v2996_v53  ;;  %v3065_v53 = vld [vmem:[#allocation10 + $0x1a8] sm:$0xf0] }
 0x46c   : > { %v3068_v54 = vor.u32 %v3412_v52, %v3065_v53 }
 0x46d   : > { %1732 = vmatpush.bf16.msra.mxu1 %v2908_v15  ;;  %v3084_v15 = vor.u32 %v3417_v27, %v3081_v28  ;;  %v3379_v27 = vld [vmem:[#allocation10 + $0x84] sm:$0xf0] }
 0x46e   : > { %1775 = vmatpush.bf16.msra.mxu3 %v1688_v2 }
 0x46f   : > { %1842 = vmatpush.bf16.msra.mxu2 %v2972_v6  ;;  %v1691_v33 = vand.u32 %v3084_v15, %v4242_v4  ;;  %v3373_v15 = vld [vmem:[#allocation10 + $0x54] sm:$0xf0] }
 0x471   : > { %1733 = vmatpush.bf16.msra.mxu1 %v2884_v43  ;;  %v3418_v43 = vld [vmem:[#allocation10 + $0x1c4] sm:$0xf] }
 0x472   : > { %1776 = vmatpush.bf16.msra.mxu3 %v3056_v9  ;;  %v3092_v45 = vor.u32 %v3418_v43, %v3089_v44  ;;  %v3015_v9 = vld [vmem:[#allocation10 + $0x130] sm:$0xf] }
 0x473   : > { %1843 = vmatpush.bf16.msra.mxu2 %v2948_v14  ;;  %v3063_v14 = vld [vmem:[#allocation10 + $0x190] sm:$0xf] }
 0x475   : > { %1734 = vmatpush.bf16.msra.mxu1 %v2860_v62 }
 0x477   : > { %1844 = vmatpush.bf16.msra.mxu2 %v2924_v25 }
 0x479   : > { %1803 = vmatpush.bf16.msrb.mxu1 %v1691_v33 }
 0x47b   : > { %1845 = vmatpush.bf16.msra.mxu2 %v2900_v34  ;;  %v1750_v34 = vpop.f32.mrf.mxu0 }
 0x4c5   : > { %v1269_v29 = vpop.xlane.xlu2 %1268 }
 0x4c6   : > { %v4438_v32 = vmul.f32 0.0078125, %v1269_v29 }
 0x4c7   : > { %v1277_v37 = vpop.xlane.xlu0 %1276 }
 0x4c8   : > { %v1284_v39 = vmul.f32 %v4438_v32, %v4438_v32  ;;  %v1280_v40 = vmul.f32 0.0078125, %v1277_v37  ;;  %v3057_v37 = vld [vmem:[#allocation10 + $0x1a0] sm:$0xf0]  ;;  %v1282_v63 = vsub.f32 %v4425_v58, %v4438_v32  ;;  %v3016_v58 = vor.u32 %v3403_v13, %v3015_v9  ;;  %v2991_v32 = vld [vmem:[#allocation10 + $0x100] sm:$0xf] }
 0x4c9   : > { %v3060_v38 = vor.u32 %v3411_v36, %v3057_v37  ;;  %v4476_v36 = vpop.f32.mrf.mxu0  ;;  %v4478_v37 = vld [vmem:[#allocation12] sm:$0x3f]  ;;  %v3207_v9 = vld [vmem:[%s4765_s12 + $0xd0] sm:$0xf]  ;;  %v3448_v13 = vld [vmem:[%s4765_s12 + $0xd4] sm:$0xf] }
 0x4ca   : > { %v1286_v47 = vsub.f32 %v1280_v40, %v1284_v39  ;;  %v3364_v39 = vld [vmem:[#allocation10 + $0x14] sm:$0xf]  ;;  %v2873_v40 = vld [vmem:[#allocation10 + $0x28] sm:$0xf0] }
 0x4cb   : > { %v2876_v41 = vor.u32 %v3364_v39, %v2873_v40  ;;  %1804 = vmatpush.bf16.msrb.mxu1 %v3060_v38  ;;  %v1376_v39 = vperm.slane %v4478_v37, 1 }
 0x4cc   : > { %v4442_v57 = vadd.f32 1e-05, %v1286_v47  ;;  %v1697_v47 = vand.u32 %v3092_v45, %v4242_v4  ;;  %v2968_v4 = vor.u32 %v3391_v22, %v2967_v21 }
 0x4cd   : > { %v1271_v61 = vpop.xlane.xlu1 %1270  ;;  %1846 = vmatpush.bf16.msra.mxu2 %v2876_v41 }
 0x4ce   : > { %3625 = vrsqrt.f32 %v4442_v57  ;;  %v4446_v11 = vmul.f32 0.0078125, %v1271_v61  ;;  %1859 = vmatpush.bf16.msra.mxu0 %v1697_v47  ;;  %vm1296_vm7 = vweird.f32 %v4442_v57 }
 0x4d0   : > { %v1285_v23 = vmul.f32 %v4446_v11, %v4446_v11  ;;  %v1283_v0 = vsub.f32 %v4430_v60, %v4446_v11  ;;  %v3397_v11 = vld [vmem:[#allocation10 + $0x114] sm:$0xf0] }
 0x4d2   : > { %1860 = vmatpush.bf16.msra.mxu0 %v3068_v54  ;;  %v3223_v54 = vld [vmem:[%s4765_s12 + $0xf0] sm:$0xf] }
 0x4d4   : > { %v4448_v17 = vpop.eup %3625 }
 0x4d5   : > { %v1279_v18 = vpop.xlane.xlu1 %1278  ;;  %v1291_v26 = vmul.f32 %v4448_v17, %v4442_v57  ;;  %vm1297_vm6 = vweird.f32 %v4448_v17  ;;  %v3409_v57 = vld [vmem:[#allocation10 + $0x174] sm:$0xf0] }
 0x4d6   : > { %v1281_v24 = vmul.f32 0.0078125, %v1279_v18  ;;  %vm1298_vm9 = vmor %vm1296_vm7, %vm1297_vm6  ;;  %v3040_v8 = vor.u32 %v3409_v57, %v3039_v3  ;;  %v2992_v18 = vor.u32 %v3397_v11, %v2991_v32  ;;  %v3450_v3 = vld [vmem:[%s4765_s12 + $0xe4] sm:$0xf] }
 0x4d7   : > { %v1292_v35 = vmul.f32 %v4448_v17, %v1291_v26  ;;  %v2919_v26 = vld [vmem:[#allocation10 + $0x70] sm:$0xf] }
 0x4d8   : > { %v1287_v29 = vsub.f32 %v1281_v24, %v1285_v23  ;;  %v2943_v23 = vld [vmem:[#allocation10 + $0xa0] sm:$0xf]  ;;  %v3385_v24 = vld [vmem:[#allocation10 + $0xb4] sm:$0xf0]  ;;  %v2920_v28 = vor.u32 %v3379_v27, %v2919_v26 }
 0x4d9   : > { %v1293_v42 = vmul.f32 0.5, %v1292_v35  ;;  %v2944_v25 = vor.u32 %v3385_v24, %v2943_v23  ;;  %v4474_v35 = vpop.f32.mrf.mxu2  ;;  %v3199_v24 = vld [vmem:[%s4765_s12 + $0xc0] sm:$0xf]  ;;  %v3446_v26 = vld [vmem:[%s4765_s12 + $0xc4] sm:$0xf] }
 0x4da   : > { %v1289_v31 = vadd.f32 1e-05, %v1287_v29  ;;  %v2895_v29 = vld [vmem:[#allocation10 + $0x40] sm:$0xf] }
 0x4db   : > { %v1294_v48 = vsub.f32 1.5, %v1293_v42  ;;  %v2896_v16 = vor.u32 %v3373_v15, %v2895_v29 }
 0x4dc   : > { %3627 = vrsqrt.f32 %v1289_v31  ;;  %vm1306_vm10 = vweird.f32 %v1289_v31 }
 0x4dd   : > { %v1295_v55 = vmul.f32 %v4448_v17, %v1294_v48 }
 0x4df   : > { %v1299_v61 = vsel %vm1298_vm9, %v4448_v17, %v1295_v55  ;;  %v3415_v17 = vld [vmem:[#allocation10 + $0x1a4] sm:$0xf0]  ;;  %v3453_v55 = vld [vmem:[%s4765_s12 + $0xf4] sm:$0xf0] }
 0x4e0   : > { %v1310_v5 = vmul.f32 %v1299_v61, %v1282_v63  ;;  %v3064_v60 = vor.u32 %v3415_v17, %v3063_v14  ;;  %v3224_v12 = vor.u32 %v3453_v55, %v3223_v54  ;;  %v1380_v63 = vperm.slane %v4478_v37, 5  ;;  %v3444_v55 = vld [vmem:[%s4765_s12 + $0xb4] sm:$0xf] }
 0x4e1   : > { %v1724_v38 = vpop.f32.mrf.mxu2 }
 0x4e2   : > { %v3628_v46 = vpop.eup %3627 }
 0x4e3   : > { %v1301_v50 = vmul.f32 %v3628_v46, %v1289_v31  ;;  %vm1307_vm8 = vweird.f32 %v3628_v46  ;;  %v3367_v31 = vld [vmem:[#allocation10 + $0x24] sm:$0xf0] }
 0x4e4   : > { %vm1308_vm11 = vmor %vm1306_vm10, %vm1307_vm8  ;;  %v2872_v33 = vor.u32 %v3367_v31, %v2871_v30  ;;  %vm2492_vm10 = vcmask 1040384  }
 0x4e5   : > { %v1302_v51 = vmul.f32 %v3628_v46, %v1301_v50 }
 0x4e7   : > { %v1303_v56 = vmul.f32 0.5, %v1302_v51 }
 0x4e9   : > { %v1304_v59 = vsub.f32 1.5, %v1303_v56  ;;  %v3452_v56 = vld [vmem:[%s4765_s12 + $0xf4] sm:$0xf] }
 0x4eb   : > { %v1305_v62 = vmul.f32 %v3628_v46, %v1304_v59 }
 0x4ed   : > { %v1309_v2 = vsel %vm1308_vm11, %v3628_v46, %v1305_v62  ;;  %v1375_v46 = vperm.slane %v4478_v37, 0  ;;  %v3228_v62 = vor.u32 %v3452_v56, %v3225_v20  ;;  %v3193_v56 = vld [vmem:[%s4765_s12 + $0xb8] sm:$0xf0] }
 0x4ee   : > { %v1311_v6 = vmul.f32 %v1309_v2, %v1283_v0  ;;  %v3451_v2 = vld [vmem:[%s4765_s12 + $0xe4] sm:$0xf0]  ;;  %v3196_v20 = vor.u32 %v3444_v55, %v3193_v56  ;;  %v3137_v56 = vld [vmem:[%s4765_s12 + $0x48] sm:$0xf0] }
 0x4ef   : > { %v3216_v57 = vor.u32 %v3451_v2, %v3215_v1  ;;  %v3435_v1 = vld [vmem:[%s4765_s12 + $0x64] sm:$0xf0] }
 0x4f0   : > { %v1312_v7 = vpack.c.bf16 %v1311_v6, %v1310_v5  ;;  %v3217_v5 = vld [vmem:[%s4765_s12 + $0xe8] sm:$0xf0] }
 0x4f1   : > { %v3220_v6 = vor.u32 %v3450_v3, %v3217_v5  ;;  %v3183_v3 = vld [vmem:[%s4765_s12 + $0xa0] sm:$0xf]  ;;  %v3434_v5 = vld [vmem:[%s4765_s12 + $0x64] sm:$0xf] }
 0x4f2   : > { %1707 = vmatmul.bf16.vlgmr.msrb.gmra.mxu3 %v1312_v7  ;;  %1735 = vmatmul.bf16.vlgmr.msra.gmra.mxu1 %v1312_v7 }
 0x4f3   : > { %1763 = vmatmul.bf16.vlgmr.msrb.gmra.mxu2 %v1312_v7  ;;  %1791 = vmatmul.bf16.vlgmr.msrb.gmra.mxu0 %v1312_v7 }
 0x4f4   : > { %1811 = vmatpush.bf16.msrb.mxu3 %v3040_v8  ;;  %1831 = vmatpush.bf16.msra.mxu1 %v1694_v10  ;;  %v3449_v10 = vld [vmem:[%s4765_s12 + $0xd4] sm:$0xf0] }
 0x4f5   : > { %2171 = vmatpush.bf16.msrb.mxu2 %v3228_v62  ;;  %v3208_v17 = vor.u32 %v3449_v10, %v3207_v9  ;;  %v3442_v9 = vld [vmem:[%s4765_s12 + $0xa4] sm:$0xf]  ;;  %v3185_v10 = vld [vmem:[%s4765_s12 + $0xa8] sm:$0xf0] }
 0x4f8   : > { %1812 = vmatpush.bf16.msrb.mxu3 %v3016_v58  ;;  %1832 = vmatpush.bf16.msra.mxu1 %v3064_v60  ;;  %v3209_v58 = vld [vmem:[%s4765_s12 + $0xd8] sm:$0xf0] }
 0x4f9   : > { %2172 = vmatpush.bf16.msrb.mxu2 %v3220_v6  ;;  %v3212_v32 = vor.u32 %v3448_v13, %v3209_v58  ;;  %v1377_v13 = vperm.slane %v4478_v37, 2 }
 0x4fc   : > { %1813 = vmatpush.bf16.msrb.mxu3 %v2992_v18 }
 0x4fd   : > { %2173 = vmatpush.bf16.msrb.mxu2 %v3212_v32 }
 0x500   : > { %1814 = vmatpush.bf16.msrb.mxu3 %v2968_v4 }
 0x502   : > { %3095 = vmatmul.msk.bf16.vlgmr.msra.gmra.mxu3 %vm769_vm2, %v4273_v19  ;;  %3096 = vmatmul.msk.bf16.vlgmr.msrb.gmra.mxu1 %vm769_vm2, %v4273_v19 }
 0x503   : > { %1847 = vmatmul.bf16.vlgmr.msra.gmra.mxu2 %v1312_v7  ;;  %3098 = vmatmul.msk.bf16.vlgmr.msra.gmra.mxu0 %vm769_vm2, %v4273_v19 }
 0x504   : > { %1815 = vmatpush.bf16.msrb.mxu3 %v2944_v25  ;;  %v3447_v25 = vld [vmem:[%s4765_s12 + $0xc4] sm:$0xf0] }
 0x505   : > { %v3200_v27 = vor.u32 %v3447_v25, %v3199_v24 }
 0x508   : > { %1816 = vmatpush.bf16.msrb.mxu3 %v2920_v28  ;;  %v3201_v28 = vld [vmem:[%s4765_s12 + $0xc8] sm:$0xf0] }
 0x509   : > { %v3204_v30 = vor.u32 %v3446_v26, %v3201_v28  ;;  %v3145_v26 = vld [vmem:[%s4765_s12 + $0x58] sm:$0xf0] }
 0x50a   : > { %v3177_v28 = vld [vmem:[%s4765_s12 + $0x98] sm:$0xf0] }
 0x50b   : > { %2174 = vmatpush.bf16.msrb.mxu2 %v3204_v30 }
 0x50c   : > { %1817 = vmatpush.bf16.msrb.mxu3 %v2896_v16 }
 0x50f   : > { %2175 = vmatpush.bf16.msrb.mxu2 %v3196_v20 }
 0x510   : > { %1818 = vmatpush.bf16.msrb.mxu3 %v2872_v33 }
 0x512   : > { %3097 = vmatmul.msk.bf16.vlgmr.msra.gmra.mxu1 %vm769_vm2, %v4273_v19 }
 0x513   : > { %1819 = vmatmul.bf16.vlgmr.msrb.gmra.mxu3 %v1312_v7  ;;  %v1378_v7 = vperm.slane %v4478_v37, 3 }
 0x514   : > { %2143 = vmatpush.bf16.msra.mxu3 %v3224_v12 }
 0x518   : > { %2144 = vmatpush.bf16.msra.mxu3 %v3216_v57  ;;  %v3443_v57 = vld [vmem:[%s4765_s12 + $0xa4] sm:$0xf0] }
 0x51c   : > { %2145 = vmatpush.bf16.msra.mxu3 %v3208_v17  ;;  %v3188_v17 = vor.u32 %v3442_v9, %v3185_v10  ;;  %v3119_v9 = vld [vmem:[%s4765_s12 + $0x20] sm:$0xf]  ;;  %v3427_v10 = vld [vmem:[%s4765_s12 + $0x24] sm:$0xf0] }
 0x51e   : > { %2176 = vmatpush.bf16.msrb.mxu2 %v3188_v17  ;;  %v3121_v17 = vld [vmem:[%s4765_s12 + $0x28] sm:$0xf0] }
 0x520   : > { %2146 = vmatpush.bf16.msra.mxu3 %v3200_v27  ;;  %v3440_v27 = vld [vmem:[%s4765_s12 + $0x94] sm:$0xf] }
 0x521   : > { %v3180_v30 = vor.u32 %v3440_v27, %v3177_v28 }
 0x523   : > { %2177 = vmatpush.bf16.msrb.mxu2 %v3180_v30 }
 0x56f   : > { %v1736_v40 = vpop.f32.mrf.mxu1 }
 0x570   : > { %v1737_v41 = vadd.f32 %v1736_v40, %v1376_v39  ;;  %v1792_v43 = vpop.f32.mrf.mxu0  ;;  %v3191_v40 = vld [vmem:[%s4765_s12 + $0xb0] sm:$0xf] }
 0x571   : > { %v1793_v21 = vadd.f32 %v1792_v43, %v1378_v7  ;;  %v3445_v43 = vld [vmem:[%s4765_s12 + $0xb4] sm:$0xf0] }
 0x572   : > { %v4483_v42 = vadd.f32 %v1750_v34, %v1737_v41  ;;  %v3159_v34 = vld [vmem:[%s4765_s12 + $0x70] sm:$0xf] }
 0x575   : > { %v4485_v44 = vpop.f32.mrf.mxu3 }
 0x576   : > { %v4487_v19 = vpop.f32.mrf.mxu2 }
 0x577   : > { %v4489_v45 = vpop.f32.mrf.mxu1 }
 0x578   : > { %v1794_v47 = vpop.f32.mrf.mxu0 }
 0x579   : > { %v1795_v22 = vadd.f32 %v1794_v47, %v1378_v7  ;;  %v3436_v47 = vld [vmem:[%s4765_s12 + $0x74] sm:$0xf]  ;;  %v3184_v7 = vor.u32 %v3443_v57, %v3183_v3 }
 0x57a   : > { %v3428_v3 = vld [vmem:[%s4765_s12 + $0x34] sm:$0xf] }
 0x57d   : > { %v1710_v48 = vpop.f32.mrf.mxu3 }
 0x57e   : > { %v1711_v50 = vadd.f32 %v1710_v48, %v1375_v46  ;;  %v4494_v51 = vpop.f32.mrf.mxu2  ;;  %v3161_v48 = vld [vmem:[%s4765_s12 + $0x78] sm:$0xf0] }
 0x57f   : > { %v1806_v53 = vpop.f32.mrf.mxu1  ;;  %v3164_v54 = vor.u32 %v3436_v47, %v3161_v48  ;;  %v3439_v48 = vld [vmem:[%s4765_s12 + $0x84] sm:$0xf0] }
 0x580   : > { %v4496_v52 = vadd.f32 %v1724_v38, %v1711_v50  ;;  %v1862_v59 = vpop.f32.mrf.mxu0  ;;  %v1807_v29 = vadd.f32 %v1806_v53, %v1793_v21  ;;  %v3437_v38 = vld [vmem:[%s4765_s12 + $0x74] sm:$0xf0]  ;;  %v3192_v53 = vor.u32 %v3445_v43, %v3191_v40  ;;  %v3135_v40 = vld [vmem:[%s4765_s12 + $0x40] sm:$0xf] }
 0x581   : > { %v3160_v41 = vor.u32 %v3437_v38, %v3159_v34  ;;  %2157 = vmatpush.bf16.msrb.mxu0 %v3164_v54 }
 0x582   : > { %2147 = vmatpush.bf16.msra.mxu3 %v3192_v53 }
 0x583   : > { %2129 = vmatpush.bf16.msrb.mxu1 %v3160_v41  ;;  %v3431_v41 = vld [vmem:[%s4765_s12 + $0x44] sm:$0xf0] }
 0x584   : > { %v3136_v47 = vor.u32 %v3431_v41, %v3135_v40 }
 0x585   : > { %v4510_v61 = vpop.f32.mrf.mxu3 }
 0x586   : > { %v1848_v0 = vpop.f32.mrf.mxu2  ;;  %2148 = vmatpush.bf16.msra.mxu3 %v3184_v7 }
 0x587   : > { %v1849_v8 = vadd.f32 %v1848_v0, %v1380_v63  ;;  %v1808_v14 = vpop.f32.mrf.mxu1  ;;  %v3151_v0 = vld [vmem:[%s4765_s12 + $0x60] sm:$0xf] }
 0x588   : > { %v1864_v18 = vpop.f32.mrf.mxu0  ;;  %v1809_v15 = vadd.f32 %v1808_v14, %v1795_v22  ;;  %v3152_v2 = vor.u32 %v3435_v1, %v3151_v0  ;;  %v3175_v22 = vld [vmem:[%s4765_s12 + $0x90] sm:$0xf] }
 0x589   : > { %v1863_v4 = vadd.f32 %v1862_v59, %v1849_v8  ;;  %v3153_v8 = vld [vmem:[%s4765_s12 + $0x68] sm:$0xf0]  ;;  %v3127_v1 = vld [vmem:[%s4765_s12 + $0x30] sm:$0xf] }
 0x58a   : > { %2130 = vmatpush.bf16.msrb.mxu1 %v3152_v2  ;;  %v3156_v14 = vor.u32 %v3434_v5, %v3153_v8  ;;  %v3429_v2 = vld [vmem:[%s4765_s12 + $0x34] sm:$0xf0]  ;;  %v3129_v5 = vld [vmem:[%s4765_s12 + $0x38] sm:$0xf0] }
 0x58b   : > { %v1868_v31 = vmul.f32 %v1863_v4, %v1807_v29  ;;  %v3441_v4 = vld [vmem:[%s4765_s12 + $0x94] sm:$0xf0]  ;;  %v1765_v29 = vadd.f32 %v4487_v19, %v1377_v13  ;;  %v3128_v57 = vor.u32 %v3429_v2, %v3127_v1  ;;  %v3132_v8 = vor.u32 %v3428_v3, %v3129_v5 }
 0x58c   : > { %2158 = vmatpush.bf16.msrb.mxu0 %v3156_v14  ;;  %v3176_v25 = vor.u32 %v3441_v4, %v3175_v22  ;;  %v3426_v14 = vld [vmem:[%s4765_s12 + $0x24] sm:$0xf]  ;;  %v3424_v22 = vld [vmem:[%s4765_s12 + $0x14] sm:$0xf]  ;;  %v3113_v4 = vld [vmem:[%s4765_s12 + $0x18] sm:$0xf0]  ;;  %v1709_v2 = vadd.f32 %v4485_v44, %v1375_v46 }
 0x58d   : > { %v4538_v60 = vpop.f32.mrf.mxu3  ;;  %v1779_v19 = vadd.f32 %v4510_v61, %v1765_v29  ;;  %v3116_v27 = vor.u32 %v3424_v22, %v3113_v4 }
 0x58e   : > { %v1850_v11 = vpop.f32.mrf.mxu2  ;;  %2149 = vmatpush.bf16.msra.mxu3 %v3176_v25  ;;  %v3103_v25 = vld [vmem:[%s4765_s12] sm:$0xf] }
 0x58f   : > { %v1851_v23 = vadd.f32 %v1850_v11, %v1380_v63  ;;  %v1834_v59 = vpop.f32.mrf.mxu1  ;;  %v1379_v63 = vperm.slane %v4478_v37, 4  ;;  %v3143_v11 = vld [vmem:[%s4765_s12 + $0x50] sm:$0xf] }
 0x590   : > { %v1963_v37 = vld [vmem:[#allocation13] sm:$0x3] }
 0x591   : > { %v1865_v16 = vadd.f32 %v1864_v18, %v1851_v23  ;;  %v3433_v18 = vld [vmem:[%s4765_s12 + $0x54] sm:$0xf0]  ;;  %v3432_v23 = vld [vmem:[%s4765_s12 + $0x54] sm:$0xf]  ;;  %v1965_v44 = vperm.slane %v1963_v37, 0  ;;  %v1966_v46 = vperm.slane %v1963_v37, 1 }
 0x592   : > { %v3144_v21 = vor.u32 %v3433_v18, %v3143_v11  ;;  %v3425_v11 = vld [vmem:[%s4765_s12 + $0x14] sm:$0xf0]  ;;  %v3124_v18 = vor.u32 %v3426_v14, %v3121_v17 }
 0x593   : > { %v1870_v33 = vmul.f32 %v1865_v16, %v1809_v15  ;;  %v3148_v16 = vor.u32 %v3432_v23, %v3145_v26  ;;  %v3423_v26 = vld [vmem:[%s4765_s12 + $0x4] sm:$0xf0] }
 0x594   : > { %2131 = vmatpush.bf16.msrb.mxu1 %v3144_v21 }
 0x595   : > { %v1878_v50 = vadd.f32 %v1870_v33, %v1868_v31  ;;  %v1767_v31 = vadd.f32 %v4494_v51, %v1377_v13  ;;  %2159 = vmatpush.bf16.msrb.mxu0 %v3148_v16  ;;  %v3167_v51 = vld [vmem:[%s4765_s12 + $0x80] sm:$0xf]  ;;  %v3120_v13 = vor.u32 %v3427_v10, %v3119_v9  ;;  %v3105_v16 = vld [vmem:[%s4765_s12 + $0x8] sm:$0xf0] }
 0x596   : > { %v1820_v12 = vpop.f32.mrf.mxu3  ;;  %v3168_v55 = vor.u32 %v3439_v48, %v3167_v51  ;;  %v1739_v48 = vadd.f32 %v4489_v45, %v1376_v39 }
 0x597   : > { %v1879_v62 = vrot.slane %v1878_v50, 4  ;;  %v1821_v32 = vadd.f32 %v1820_v12, %v1379_v63  ;;  %v1836_v43 = vpop.f32.mrf.mxu1  ;;  %v1781_v53 = vadd.f32 %v4538_v60, %v1767_v31  ;;  %v3169_v12 = vld [vmem:[%s4765_s12 + $0x88] sm:$0xf0]  ;;  %v3104_v31 = vor.u32 %v3423_v26, %v3103_v25 }
 0x598   : > { %2132 = vmatpush.bf16.msrb.mxu1 %v3136_v47  ;;  %2150 = vmatpush.bf16.msra.mxu3 %v3168_v55 }
 0x599   : > { %v1880_v6 = vadd.f32 %v1879_v62, %v1878_v50  ;;  %v1835_v34 = vadd.f32 %v1834_v59, %v1821_v32  ;;  %v3430_v50 = vld [vmem:[%s4765_s12 + $0x44] sm:$0xf]  ;;  %v3111_v32 = vld [vmem:[%s4765_s12 + $0x10] sm:$0xf] }
 0x59a   : > { %v3438_v59 = vld [vmem:[%s4765_s12 + $0x84] sm:$0xf]  ;;  %v3140_v20 = vor.u32 %v3430_v50, %v3137_v56  ;;  %v3112_v23 = vor.u32 %v3425_v11, %v3111_v32 }
 0x59b   : > { %v1881_v58 = vrot.slane %v1880_v6, 2  ;;  %v3172_v62 = vor.u32 %v3438_v59, %v3169_v12  ;;  %v1753_v59 = vadd.f32 %v4476_v36, %v1739_v48 }
 0x59c   : > { %2160 = vmatpush.bf16.msrb.mxu0 %v3140_v20  ;;  %2133 = vmatpush.bf16.msrb.mxu1 %v3128_v57 }
 0x59d   : > { %v1882_v24 = vadd.f32 %v1881_v58, %v1880_v6  ;;  %2178 = vmatpush.bf16.msrb.mxu2 %v3172_v62 }
 0x59e   : > { %v1822_v15 = vpop.f32.mrf.mxu3 }
 0x59f   : > { %v1883_v33 = vrot.slane %v1882_v24, 1  ;;  %v1823_v38 = vadd.f32 %v1822_v15, %v1379_v63  ;;  %v1867_v63 = vmul.f32 %v1835_v34, %v1779_v19  ;;  %v3422_v15 = vld [vmem:[%s4765_s12 + $0x4] sm:$0xf] }
 0x5a0   : > { %2161 = vmatpush.bf16.msrb.mxu0 %v3132_v8  ;;  %2134 = vmatpush.bf16.msrb.mxu1 %v3120_v13  ;;  %v3108_v34 = vor.u32 %v3422_v15, %v3105_v16 }
 0x5a1   : > { %v1884_v54 = vadd.f32 %v1883_v33, %v1882_v24  ;;  %v1837_v61 = vadd.f32 %v1836_v43, %v1823_v38 }
 0x5a3   : > { %v1886_v60 = vmul.f32 %v1884_v54, %v4281_v49  ;;  %v1869_v0 = vmul.f32 %v1837_v61, %v1781_v53 }
 0x5a4   : > { %2162 = vmatpush.bf16.msrb.mxu0 %v3124_v18  ;;  %2135 = vmatpush.bf16.msrb.mxu1 %v3112_v23 }
 0x5a5   : > { %v3100_v6 = vmul.f32 -1.442695, %v1886_v60  ;;  %v1871_v7 = vadd.f32 %v1869_v0, %v1867_v63 }
 0x5a7   : > { %3629 = vpow2.f32 %v3100_v6  ;;  %v1872_v58 = vrot.slane %v1871_v7, 4 }
 0x5a8   : > { %2163 = vmatpush.bf16.msrb.mxu0 %v3116_v27  ;;  %2136 = vmatpush.bf16.msrb.mxu1 %v3104_v31 }
 0x5a9   : > { %v1873_v21 = vadd.f32 %v1872_v58, %v1871_v7 }
 0x5ab   : > { %v1874_v24 = vrot.slane %v1873_v21, 2 }
 0x5ac   : > { %2164 = vmatpush.bf16.msrb.mxu0 %v3108_v34  ;;  %v3461_v34 = vld [vmem:[#allocation15 + $0x38] sm:$0xff] }
 0x5ad   : > { %v3630_v28 = vpop.eup %3629  ;;  %v1875_v29 = vadd.f32 %v1874_v24, %v1873_v21  ;;  %2386 = vmatpush.bf16.msra.mxu1 %v3461_v34 }
 0x5ae   : > { %v1894_v30 = vadd.f32 1.0, %v3630_v28 }
 0x5af   : > { %v1876_v33 = vrot.slane %v1875_v29, 1 }
 0x5b0   : > { %3631 = vrcp.f32 %v1894_v30  ;;  %v1921_v51 = vand.u32 2147483648, %v1894_v30  ;;  %v1919_v53 = vand.u32 2147483647, %v1894_v30  ;;  %vm1915_vm12 = vweird.f32 %v1894_v30 }
 0x5b1   : > { %v1877_v38 = vadd.f32 %v1876_v33, %v1875_v29 }
 0x5b2   : > { %v1922_v56 = vor.u32 1.1754944e-38, %v1921_v51  ;;  %vm1920_vm14 = vcmp.eq.f32.partialorder %v1919_v53, 8.507059e+37  ;;  %v3467_v51 = vld [vmem:[#allocation15 + $0x68] sm:$0xff] }
 0x5b3   : > { %v1885_v40 = vmul.f32 %v1877_v38, %v4281_v49  ;;  %v3469_v38 = vld [vmem:[#allocation15 + $0x78] sm:$0xff] }
 0x5b4   : > { %2399 = vmatpush.bf16.msrb.mxu3 %v3469_v38 }
 0x5b5   : > { %v3099_v41 = vmul.f32 -1.442695, %v1885_v40 }
 0x5b6   : > { %v3632_v19 = vpop.eup %3631 }
 0x5b7   : > { %3633 = vpow2.f32 %v3099_v41  ;;  %v1911_v43 = vmul.f32 %v3632_v19, %v1894_v30  ;;  %vm1916_vm2 = vweird.f32 %v3632_v19  ;;  %v3460_v41 = vld [vmem:[#allocation15 + $0x30] sm:$0xff] }
 0x5b8   : > { %vm1917_vm13 = vmor %vm1915_vm12, %vm1916_vm2  ;;  %2387 = vmatpush.bf16.msra.mxu1 %v3460_v41 }
 0x5b9   : > { %v1912_v47 = vsub.f32 1.0, %v1911_v43 }
 0x5bb   : > { %v1913_v50 = vmul.f32 %v3632_v19, %v1912_v47  ;;  %v3459_v47 = vld [vmem:[#allocation15 + $0x28] sm:$0xff] }
 0x5bc   : > { %2388 = vmatpush.bf16.msra.mxu1 %v3459_v47 }
 0x5bd   : > { %v3634_v54 = vpop.eup %3633  ;;  %v1914_v61 = vadd.f32 %v3632_v19, %v1913_v50 }
 0x5be   : > { %v1893_v55 = vadd.f32 1.0, %v3634_v54 }
 0x5bf   : > { %v1918_v12 = vsel %vm1917_vm13, %v3632_v19, %v1914_v61  ;;  %v3468_v19 = vld [vmem:[#allocation15 + $0x70] sm:$0xff]  ;;  %v3458_v61 = vld [vmem:[#allocation15 + $0x20] sm:$0xff] }
 0x5c0   : > { %3635 = vrcp.f32 %v1893_v55  ;;  %v1923_v20 = vsel %vm1920_vm14, %v1922_v56, %v1918_v12  ;;  %v1906_v1 = vand.u32 2147483648, %v1893_v55  ;;  %v1904_v36 = vand.u32 2147483647, %v1893_v55  ;;  %2400 = vmatpush.bf16.msrb.mxu3 %v3468_v19  ;;  %2389 = vmatpush.bf16.msra.mxu1 %v3458_v61  ;;  %v3472_v61 = vld [vmem:[#allocation16 + $0x10] sm:$0xff] }
 0x5c1   : > { %v1926_v62 = vmul.f32 %v1923_v20, %v4483_v42  ;;  %v1928_v60 = vmul.f32 %v1923_v20, %v1753_v59  ;;  %vm1900_vm0 = vweird.f32 %v1893_v55  ;;  %v1723_v42 = vadd.f32 %v4474_v35, %v1709_v2  ;;  %v3457_v20 = vld [vmem:[#allocation15 + $0x18] sm:$0xff]  ;;  %v3455_v2 = vld [vmem:[#allocation15 + $0x8] sm:$0xff] }
 0x5c2   : > { %v1907_v5 = vor.u32 1.1754944e-38, %v1906_v1  ;;  %vm1905_vm3 = vcmp.eq.f32.partialorder %v1904_v36, 8.507059e+37 }
 0x5c3   : > { %v1930_v63 = vpack.c.bf16 %v1928_v60, %v1926_v62  ;;  %v3465_v62 = vld [vmem:[#allocation15 + $0x58] sm:$0xff]  ;;  %v3456_v60 = vld [vmem:[#allocation15 + $0x10] sm:$0xff] }
 0x5c4   : > { %2401 = vmatpush.bf16.msrb.mxu3 %v3467_v51  ;;  %2390 = vmatpush.bf16.msra.mxu1 %v3457_v20 }
 0x5c5   : > { %2151 = vmatmul.bf16.vlgmr.msra.gmra.mxu3 %v1930_v63  ;;  %2179 = vmatmul.bf16.vlgmr.msrb.gmra.mxu2 %v1930_v63 }
 0x5c6   : > { %v3636_v39 = vpop.eup %3635 }
 0x5c7   : > { %v1896_v45 = vmul.f32 %v3636_v39, %v1893_v55  ;;  %vm1901_vm15 = vweird.f32 %v3636_v39  ;;  %v3466_v55 = vld [vmem:[#allocation15 + $0x60] sm:$0xff] }
 0x5c8   : > { %vm1902_vm1 = vmor %vm1900_vm0, %vm1901_vm15  ;;  %2402 = vmatpush.bf16.msrb.mxu3 %v3466_v55  ;;  %2391 = vmatpush.bf16.msra.mxu1 %v3456_v60  ;;  %v3471_v55 = vld [vmem:[#allocation16 + $0x8] sm:$0xff] }
 0x5c9   : > { %v1897_v0 = vsub.f32 1.0, %v1896_v45 }
 0x5cb   : > { %v1898_v3 = vmul.f32 %v3636_v39, %v1897_v0 }
 0x5cc   : > { %2403 = vmatpush.bf16.msrb.mxu3 %v3465_v62  ;;  %2392 = vmatpush.bf16.msra.mxu1 %v3455_v2 }
 0x5cd   : > { %v1899_v57 = vadd.f32 %v3636_v39, %v1898_v3  ;;  %v3463_v3 = vld [vmem:[#allocation15 + $0x48] sm:$0xff] }
 0x5cf   : > { %v1903_v6 = vsel %vm1902_vm1, %v3636_v39, %v1899_v57  ;;  %v3464_v39 = vld [vmem:[#allocation15 + $0x50] sm:$0xff] }
 0x5d0   : > { %v1908_v7 = vsel %vm1905_vm3, %v1907_v5, %v1903_v6  ;;  %2404 = vmatpush.bf16.msrb.mxu3 %v3464_v39 }
 0x5d1   : > { %v1925_v8 = vmul.f32 %v1908_v7, %v1723_v42  ;;  %v1927_v9 = vmul.f32 %v1908_v7, %v4496_v52  ;;  %v3454_v42 = vld [vmem:[#allocation15] sm:$0xff] }
 0x5d2   : > { %v3462_v7 = vld [vmem:[#allocation15 + $0x40] sm:$0xff]  ;;  %2393 = vmatpush.bf16.msra.mxu1 %v3454_v42 }
 0x5d3   : > { %v1929_v10 = vpack.c.bf16 %v1927_v9, %v1925_v8 }
 0x5d4   : > { %2405 = vmatpush.bf16.msrb.mxu3 %v3463_v3 }
 0x5d5   : > { %2137 = vmatmul.bf16.vlgmr.msrb.gmra.mxu1 %v1929_v10  ;;  %2165 = vmatmul.bf16.vlgmr.msrb.gmra.mxu0 %v1929_v10  ;;  %v3477_v10 = vld [vmem:[#allocation16 + $0x38] sm:$0xff] }
 0x5d6   : > { %2479 = vmatpush.bf16.msra.mxu0 %v3477_v10 }
 0x5d8   : > { %2406 = vmatpush.bf16.msrb.mxu3 %v3462_v7 }
 0x648   : > { %v2152_v13 = vpop.f32.mrf.mxu3  ;;  %v2180_v14 = vpop.f32.mrf.mxu2 }
 0x650   : > { %v2154_v26 = vpop.f32.mrf.mxu3  ;;  %v2182_v27 = vpop.f32.mrf.mxu2 }
 0x652   : > { %v2138_v17 = vpop.f32.mrf.mxu1  ;;  %v2166_v58 = vpop.f32.mrf.mxu0 }
 0x653   : > { %v2139_v32 = vadd.f32 %v2138_v17, %v1965_v44  ;;  %v2167_v11 = vadd.f32 %v2166_v58, %v1966_v46  ;;  %v3475_v58 = vld [vmem:[#allocation16 + $0x28] sm:$0xff] }
 0x655   : > { %v4714_v18 = vadd.f32 %v2152_v13, %v2139_v32  ;;  %v4716_v35 = vadd.f32 %v2180_v14, %v2167_v11 }
 0x657   : > { %v2185_v21 = vadd.f32 %v4716_v35, %v4714_v18  ;;  %v2193_v24 = vmul.f32 %v4714_v18, %v4714_v18  ;;  %v2194_v25 = vmul.f32 %v4716_v35, %v4716_v35 }
 0x659   : > { %2186 = vadd.xlane.f32.xlu0 %v2185_v21  ;;  %v2197_v16 = vadd.f32 %v2194_v25, %v2193_v24  ;;  %v3474_v24 = vld [vmem:[#allocation16 + $0x20] sm:$0xff] }
 0x65a   : > { %v2140_v52 = vpop.f32.mrf.mxu1  ;;  %v2168_v22 = vpop.f32.mrf.mxu0 }
 0x65b   : > { %v2141_v4 = vadd.f32 %v2140_v52, %v1965_v44  ;;  %v2169_v23 = vadd.f32 %v2168_v22, %v1966_v46  ;;  %v3476_v46 = vld [vmem:[#allocation16 + $0x30] sm:$0xff] }
 0x65c   : > { %2480 = vmatpush.bf16.msra.mxu0 %v3476_v46 }
 0x65d   : > { %v4724_v28 = vadd.f32 %v2154_v26, %v2141_v4  ;;  %v4726_v29 = vadd.f32 %v2182_v27, %v2169_v23 }
 0x65f   : > { %v2188_v15 = vadd.f32 %v4726_v29, %v4724_v28  ;;  %v2195_v30 = vmul.f32 %v4724_v28, %v4724_v28  ;;  %v2196_v31 = vmul.f32 %v4726_v29, %v4726_v29 }
 0x660   : > { %2481 = vmatpush.bf16.msra.mxu0 %v3475_v58 }
 0x661   : > { %2189 = vadd.xlane.f32.xlu1 %v2188_v15  ;;  %2198 = vadd.xlane.f32.xlu0 %v2197_v16  ;;  %v2200_v33 = vadd.f32 %v2196_v31, %v2195_v30 }
 0x664   : > { %2482 = vmatpush.bf16.msra.mxu0 %v3474_v24 }
 0x669   : > { %2201 = vadd.xlane.f32.xlu1 %v2200_v33  ;;  %v3473_v33 = vld [vmem:[#allocation16 + $0x18] sm:$0xff] }
 0x66a   : > { %2483 = vmatpush.bf16.msra.mxu0 %v3473_v33 }
 0x66e   : > { %2484 = vmatpush.bf16.msra.mxu0 %v3472_v61 }
 0x672   : > { %2485 = vmatpush.bf16.msra.mxu0 %v3471_v55 }
 0x6cc   : > { %v2187_v40 = vpop.xlane.xlu0 %2186 }
 0x6cd   : > { %v4734_v43 = vmul.f32 0.00390625, %v2187_v40 }
 0x6cf   : > { %v2209_v53 = vmul.f32 %v4734_v43, %v4734_v43  ;;  %v2205_v52 = vsub.f32 %v4714_v18, %v4734_v43  ;;  %v2206_v22 = vsub.f32 %v4716_v35, %v4734_v43 }
 0x6d4   : > { %v2190_v48 = vpop.xlane.xlu1 %2189  ;;  %v2199_v50 = vpop.xlane.xlu0 %2198 }
 0x6d5   : > { %v2203_v54 = vmul.f32 0.00390625, %v2199_v50  ;;  %v2192_v59 = vmul.f32 0.00390625, %v2190_v48 }
 0x6d7   : > { %v2211_v56 = vsub.f32 %v2203_v54, %v2209_v53  ;;  %v2210_v45 = vmul.f32 %v2192_v59, %v2192_v59  ;;  %v2207_v4 = vsub.f32 %v4724_v28, %v2192_v59  ;;  %v2208_v23 = vsub.f32 %v4726_v29, %v2192_v59 }
 0x6d9   : > { %v2213_v12 = vadd.f32 1e-05, %v2211_v56  ;;  %v3470_v56 = vld [vmem:[#allocation16] sm:$0xff] }
 0x6da   : > { %2486 = vmatpush.bf16.msra.mxu0 %v3470_v56 }
 0x6db   : > { %3637 = vrsqrt.f32 %v2213_v12  ;;  %vm2221_vm5 = vweird.f32 %v2213_v12 }
 0x6dc   : > { %v2202_v63 = vpop.xlane.xlu1 %2201 }
 0x6dd   : > { %v2204_v0 = vmul.f32 0.00390625, %v2202_v63 }
 0x6df   : > { %v2212_v1 = vsub.f32 %v2204_v0, %v2210_v45  ;;  %v2430_v0 = vld [vmem:[#allocation18 + $0x1] sm:$0x1] }
 0x6e1   : > { %v3638_v36 = vpop.eup %3637  ;;  %v2214_v57 = vadd.f32 1e-05, %v2212_v1 }
 0x6e2   : > { %v2216_v5 = vmul.f32 %v3638_v36, %v2213_v12  ;;  %vm2222_vm4 = vweird.f32 %v3638_v36  ;;  %v2289_v12 = vld [vmem:[#allocation18] sm:$0x1] }
 0x6e3   : > { %3639 = vrsqrt.f32 %v2214_v57  ;;  %vm2223_vm7 = vmor %vm2221_vm5, %vm2222_vm4  ;;  %vm2231_vm8 = vweird.f32 %v2214_v57 }
 0x6e4   : > { %v2217_v6 = vmul.f32 %v3638_v36, %v2216_v5 }
 0x6e6   : > { %v2218_v8 = vmul.f32 0.5, %v2217_v6 }
 0x6e8   : > { %v2219_v37 = vsub.f32 1.5, %v2218_v8 }
 0x6e9   : > { %v3640_v9 = vpop.eup %3639 }
 0x6ea   : > { %v2226_v44 = vmul.f32 %v3640_v9, %v2214_v57  ;;  %v2220_v14 = vmul.f32 %v3638_v36, %v2219_v37  ;;  %vm2232_vm6 = vweird.f32 %v3640_v9 }
 0x6eb   : > { %vm2233_vm9 = vmor %vm2231_vm8, %vm2232_vm6 }
 0x6ec   : > { %v2227_v13 = vmul.f32 %v3640_v9, %v2226_v44  ;;  %v2224_v11 = vsel %vm2223_vm7, %v3638_v36, %v2220_v14 }
 0x6ed   : > { %v2235_v26 = vmul.f32 %v2224_v11, %v2205_v52  ;;  %v2236_v27 = vmul.f32 %v2224_v11, %v2206_v22 }
 0x6ee   : > { %v2228_v17 = vmul.f32 0.5, %v2227_v13 }
 0x6f0   : > { %v2229_v32 = vsub.f32 1.5, %v2228_v17 }
 0x6f2   : > { %v2230_v21 = vmul.f32 %v3640_v9, %v2229_v32 }
 0x6f4   : > { %v2234_v25 = vsel %vm2233_vm9, %v3640_v9, %v2230_v21 }
 0x6f5   : > { %v2237_v15 = vmul.f32 %v2234_v25, %v2207_v4  ;;  %v2238_v16 = vmul.f32 %v2234_v25, %v2208_v23 }
 0x6f7   : > { %v2239_v30 = vadd.f32 %v2237_v15, %v2235_v26  ;;  %v2246_v31 = vadd.f32 %v2238_v16, %v2236_v27 }
 0x6f9   : > { %v2240_v18 = vrot.slane %v2239_v30, 4  ;;  %v2247_v34 = vrot.slane %v2246_v31, 4 }
 0x6fb   : > { %v2241_v38 = vadd.f32 %v2240_v18, %v2239_v30  ;;  %v2248_v35 = vadd.f32 %v2247_v34, %v2246_v31 }
 0x6fd   : > { %v2242_v28 = vrot.slane %v2241_v38, 2  ;;  %v2249_v40 = vrot.slane %v2248_v35, 2 }
 0x6ff   : > { %v2243_v29 = vadd.f32 %v2242_v28, %v2241_v38  ;;  %v2250_v41 = vadd.f32 %v2249_v40, %v2248_v35 }
 0x701   : > { %v2244_v19 = vrot.slane %v2243_v29, 1  ;;  %v2251_v43 = vrot.slane %v2250_v41, 1 }
 0x703   : > { %v2245_v47 = vadd.f32 %v2244_v19, %v2243_v29  ;;  %v2252_v51 = vadd.f32 %v2251_v43, %v2250_v41 }
 0x705   : > { %v2253_v48 = vmul.f32 %v2245_v47, %v4281_v49  ;;  %v2254_v50 = vmul.f32 %v2252_v51, %v4281_v49 }
 0x707   : > { %v2255_v53 = vpack.c.bf16 %v2253_v48, %v2253_v48  ;;  %v2256_v54 = vpack.c.bf16 %v2254_v50, %v2254_v50 }
 0x709   : > { %2394 = vmatmul.bf16.vlgmr.msra.gmra.mxu1 %v2255_v53  ;;  %2407 = vmatmul.bf16.vlgmr.msrb.gmra.mxu3 %v2256_v54 }
 0x786   : > { %v2395_v59 = vpop.f32.mrf.mxu1 }
 0x787   : > { %v2396_v20 = vadd.f32 %v2395_v59, %v2289_v12 }
 0x78c   : > { %v2408_v62 = vpop.f32.mrf.mxu3 }
 0x78d   : > { %v2409_v60 = vadd.f32 %v2408_v62, %v2396_v20 }
 0x78e   : > { %v2397_v63 = vpop.f32.mrf.mxu1 }
 0x78f   : > { %v2412_v39 = vmax.f32 %v2409_v60, 0.0 }
 0x791   : > { %v2413_v45 = vpack.c.bf16 %v2412_v39, %v2412_v39 }
 0x793   : > { %2487 = vmatmul.bf16.vlgmr.msra.gmra.mxu0 %v2413_v45 }
 0x794   : > { %v2410_v49 = vpop.f32.mrf.mxu3 }
 0x810   : > { %v2488_v1 = vpop.f32.mrf.mxu0 }
 0x811   : > { %v2489_v2 = vadd.f32 %v2488_v1, %v2430_v0 }
 0x813   : > { %v2493_v3 = vsel %vm2492_vm10, %v2489_v2, -inf }
 0x814   : > { %2494 = vmax.xlane.f32.xlu2 %v2493_v3 }
 0x818   : > { %v2490_v36 = vpop.f32.mrf.mxu0 }
 0x887   : > { %v2495_v57 = vpop.xlane.xlu2 %2494 }
 0x888   : > { %v2496_v5 = vsub.f32 %v2489_v2, %v2495_v57 }
 0x88a   : > { %v2497_v42 = vmul.f32 1.442695, %v2496_v5 }
 0x88c   : > { %3641 = vpow2.f32 %v2497_v42 }
 0x892   : > { %v3642_v6 = vpop.eup %3641 }
 0x893   : > { %v2499_v7 = vsel %vm2492_vm10, %v3642_v6, 0.0 }
 0x894   : > { %2500 = vadd.xlane.f32.xlu0 %v2499_v7 }
 0x907   : > { %v2501_v8 = vpop.xlane.xlu0 %2500 }
 0x908   : > { %3643 = vlog2.f32 %v2501_v8 }
 0x90e   : > { %v3644_v9 = vpop.eup %3643 }
 0x90f   : > { %v2503_v10 = vmul.f32 0.6931472, %v3644_v9 }
 0x911   : > { %v2504_v37 = vsub.f32 %v2496_v5, %v2503_v10 }
 0x913   : > { %v2505_v44 = vperm.slane %v2504_v37, 0 }
 0x915   : > { %2506 = vst [vmem:[%s736_s27] sm:$0xff] %v2505_v44 }
 0x916 PF: > { %s4789_s4 = sld [smem:[#allocation25_spill]] }
 0x91c   : > { %s33_s24 = sadd.s32 1, %s4789_s4  }
 0x91d   : > { %p30_p7 = scmp.ge.s32.totalorder %s33_s24, 4  }
 0x91f   :  { %32 = sbr.rel (!%p30_p7) target bundleno = 11 (0xb), region = 166 }
 0x924   :  { %2526 = vsyncpa [#allocation3], 1 }
 0x925   :  { %2528 = vsyncpa [#allocation3 + $0x1], 1 }
 0x926   :  { %2529 = vsyncpa [#allocation5], 1 }
 0x927   :  { %2530 = vsyncpa [#allocation8], 1 }
 0x928   :  { %2531 = vsyncpa [#allocation11], 1 }
 0x929   :  { %2532 = vsyncpa [#allocation14], 1 }
 0x92a   :  { %2533 = vsyncpa [#allocation17], 1 }

</bundles_post_ra>
